<compile_context>
chip_gen: v5e
topology: v5e:2x2
jax: 0.10.0
libtpu: 0.0.40
codegen_flags: <defaults>
</compile_context>

<pallas_src>
import functools
import math

import jax
import jax.numpy as jnp
import numpy as np
from jax.experimental import pallas as pl
from jax.experimental.pallas import tpu as pltpu

_NEG_INF = -1e30                      # finite mask value: avoids inf-inf -> NaN
_VMEM_LIMIT = 32 * 1024 * 1024        # safe on v5e/v6e/v7x


# ----------------------------------------------------------------------------
# Linear projection kernel: row-tiled GEMM, weight resident in VMEM
# ----------------------------------------------------------------------------
def _linear_kernel(x_ref, wt_ref, b_ref, o_ref):
    o_ref[...] = (
        jnp.dot(x_ref[...], wt_ref[...], preferred_element_type=jnp.float32)
        + b_ref[...]
    ).astype(o_ref.dtype)


def _row_tile(n, target=256):
    """Largest row tile <= target that divides n and keeps the sublane dim legal."""
    if n <= target:
        return n
    for t in range(target, 7, -1):
        if n % t == 0 and t % 8 == 0:
            return t
    return n


def pallas_linear(x2d, w, b, *, row_tile=256):
    """y = x2d @ w.T + b  (PyTorch nn.Linear semantics).  x2d: (N, Din)."""
    N, Din = x2d.shape
    Dout = w.shape[0]
    tm = _row_tile(N, row_tile)
    wt = jnp.transpose(w)                    # (Din, Dout), once per call
    b2 = b.reshape(1, Dout)
    return pl.pallas_call(
        _linear_kernel,
        out_shape=jax.ShapeDtypeStruct((N, Dout), jnp.float32),
        grid=(N // tm,),
        in_specs=[
            pl.BlockSpec((tm, Din), lambda i: (i, 0)),     # activations stream
            pl.BlockSpec((Din, Dout), lambda i: (0, 0)),   # weight stays resident
            pl.BlockSpec((1, Dout), lambda i: (0, 0)),
        ],
        out_specs=pl.BlockSpec((tm, Dout), lambda i: (i, 0)),
        compiler_params=pltpu.CompilerParams(
            dimension_semantics=("parallel",),
            vmem_limit_bytes=_VMEM_LIMIT,
        ),
    )(x2d, wt, b2)


# ----------------------------------------------------------------------------
# Attention kernel: one batch row per grid step, all heads in-kernel
# ----------------------------------------------------------------------------
def _attn_kernel(q_ref, k_ref, v_ref, ebig_t_ref, mask_ref, o_ref, *,
                 inv_scale, heads, matmul_dtype):
    # q_ref: (Sq, H, Hd), k_ref/v_ref: (Sk, H, Hd),
    # ebig_t_ref: (Hd, Sq+Sk-1), mask_ref: (H, Sq, Sk) int8, o_ref: (Sq, H, Hd)
    sq = q_ref.shape[0]
    sk = k_ref.shape[0]
    ebig_t = ebig_t_ref[...]

    for h in range(heads):                       # static unroll over heads
        q = q_ref[:, h, :] * inv_scale           # scale folded into Q once
        k = k_ref[:, h, :]
        v = v_ref[:, h, :]
        eb = ebig_t
        if matmul_dtype != jnp.float32:
            q = q.astype(matmul_dtype)
            k = k.astype(matmul_dtype)
            v = v.astype(matmul_dtype)
            eb = eb.astype(matmul_dtype)

        # Content logits on the MXU: contract head_dim, no explicit transpose.
        logits = jax.lax.dot_general(
            q, k, dimension_numbers=(((1,), (1,)), ((), ())),
            preferred_element_type=jnp.float32)              # (Sq, Sk)

        # Relative-position logits: MXU matmul against the diagonal-expanded
        # table, then the relative shift pos[i, j] = rel[i, j - i + Sq - 1].
        rel = jnp.dot(q, eb, preferred_element_type=jnp.float32)   # (Sq, Nd)
        pos = jnp.concatenate(
            [jax.lax.slice(rel, (i, sq - 1 - i), (i + 1, sq - 1 - i + sk))
             for i in range(sq)],
            axis=0)                                                 # (Sq, Sk)
        # TODO(synk): for long sequences replace the unrolled per-row shift with
        # a strided pltpu.roll and tile the key axis flash-style.

        logits = logits + pos
        maskf = mask_ref[h].astype(jnp.float32)
        logits = jnp.where(maskf > 0.5, _NEG_INF, logits)

        m = jnp.max(logits, axis=-1, keepdims=True)
        p = jnp.exp(logits - m)
        denom = jnp.sum(p, axis=-1, keepdims=True)
        p = p * pl.reciprocal(denom, approx=False)    # EUP reciprocal, no VPU divide

        if matmul_dtype != jnp.float32:
            p = p.astype(matmul_dtype)
        o_ref[:, h, :] = jnp.dot(
            p, v, preferred_element_type=jnp.float32).astype(o_ref.dtype)


def pallas_attention(Qp, Kp, Vp, ebig_t, mask_i8, inv_scale, *,
                     matmul_dtype=jnp.float32):
    """Qp/Kp/Vp: (B, S, H, Hd); ebig_t: (Hd, Sq+Sk-1); mask_i8: (B, H, Sq, Sk)."""
    B, Sq, H, Hd = Qp.shape
    Sk = Kp.shape[1]
    Nd = ebig_t.shape[1]
    kernel = functools.partial(_attn_kernel, inv_scale=inv_scale, heads=H,
                               matmul_dtype=matmul_dtype)
    return pl.pallas_call(
        kernel,
        out_shape=jax.ShapeDtypeStruct((B, Sq, H, Hd), jnp.float32),
        grid=(B,),
        in_specs=[
            pl.BlockSpec((None, Sq, H, Hd), lambda b: (b, 0, 0, 0)),
            pl.BlockSpec((None, Sk, H, Hd), lambda b: (b, 0, 0, 0)),
            pl.BlockSpec((None, Sk, H, Hd), lambda b: (b, 0, 0, 0)),
            pl.BlockSpec((Hd, Nd), lambda b: (0, 0)),
            pl.BlockSpec((None, H, Sq, Sk), lambda b: (b, 0, 0, 0)),
        ],
        out_specs=pl.BlockSpec((None, Sq, H, Hd), lambda b: (b, 0, 0, 0)),
        compiler_params=pltpu.CompilerParams(
            dimension_semantics=("parallel",),
            vmem_limit_bytes=_VMEM_LIMIT,
        ),
    )(Qp, Kp, Vp, ebig_t, mask_i8)


# ----------------------------------------------------------------------------
# Glue
# ----------------------------------------------------------------------------
def _diag_pos_table(len_q, len_k, max_len, embedding):
    """Ebig[j] = embedding[clip(j - (len_q-1), -L, L) + L]  -> (len_q+len_k-1, Hd)."""
    delta = jnp.arange(len_q + len_k - 1) - (len_q - 1)
    idx = jnp.clip(delta, -max_len, max_len) + max_len
    return embedding[idx, :]


def divided_attention_forward(params, x_q, x_k, x_v, mask, *, heads, max_pos_len,
                              matmul_dtype=jnp.float32):
    """Mirror of DividedAttentionSublayer.forward with sentence_lengths=None."""
    B, Sq, D = x_q.shape
    Sk = x_k.shape[1]
    Hd = D // heads
    inv_scale = 1.0 / math.sqrt(D / heads)

    # Row-tiled projections; outputs consumed as free (B, S, H, Hd) views.
    q = pallas_linear(x_q.reshape(B * Sq, D), params["Wq"], params["bq"]
                      ).reshape(B, Sq, heads, Hd)
    k = pallas_linear(x_k.reshape(B * Sk, D), params["Wk"], params["bk"]
                      ).reshape(B, Sk, heads, Hd)
    v = pallas_linear(x_v.reshape(B * Sk, D), params["Wv"], params["bv"]
                      ).reshape(B, Sk, heads, Hd)

    ebig_t = jnp.transpose(
        _diag_pos_table(Sq, Sk, max_pos_len, params["pos_embedding"]))  # (Hd, Nd)

    if mask is None:
        mask_i8 = jnp.zeros((B, heads, Sq, Sk), jnp.int8)
    else:
        mask_i8 = jnp.broadcast_to(mask, (B, heads, Sq, Sk)).astype(jnp.int8)

    attn = pallas_attention(q, k, v, ebig_t, mask_i8, inv_scale,
                            matmul_dtype=matmul_dtype)          # (B, Sq, H, Hd)
    return pallas_linear(attn.reshape(B * Sq, D), params["Wo"], params["bo"]
                         ).reshape(B, Sq, D)


# ----------------------------------------------------------------------------
# Pure-JAX reference (mirrors the PyTorch module)
# ----------------------------------------------------------------------------
def arrange_char_pos_embedding(len_k, len_q, max_len, embedding):
    k = jnp.arange(len_k)
    q = jnp.arange(len_q)
    indices = k[None, :] - q[:, None]
    indices = jnp.clip(indices, -max_len, max_len) + max_len
    return embedding[indices, :]                 # (len_q, len_k, head_dim)


def reference_forward(params, x_q, x_k, x_v, mask, heads, max_pos_len):
    B, Sq, D = x_q.shape
    Sk = x_k.shape[1]
    Hd = D // heads
    scale = math.sqrt(D / heads)

    def lin(x, w, b):
        return x @ w.T + b

    def split_heads(x):
        return jnp.transpose(x.reshape(B, -1, heads, Hd), (0, 2, 1, 3))

    Q = split_heads(lin(x_q, params["Wq"], params["bq"]))
    K = split_heads(lin(x_k, params["Wk"], params["bk"]))
    V = split_heads(lin(x_v, params["Wv"], params["bv"]))
    logits = jnp.einsum("bhqd,bhkd->bhqk", Q, K)
    pos = arrange_char_pos_embedding(Sk, Sq, max_pos_len, params["pos_embedding"])
    pos_logits = jnp.einsum("bhqd,qkd->bhqk", Q, pos)
    logits = (logits + pos_logits) / scale
    logits = jnp.where(mask, -jnp.inf, logits)
    p = jax.nn.softmax(logits, axis=3)
    combined = jnp.einsum("bhqk,bhkd->bhqd", p, V)
    hc = jnp.transpose(combined, (0, 2, 1, 3)).reshape(B, Sq, D)
    return lin(hc, params["Wo"], params["bo"])


# ----------------------------------------------------------------------------
# Main
# ----------------------------------------------------------------------------
if __name__ == "__main__":
    B, S, D, H, MAX_POS = 2, 8, 32, 4, 8
    Hd = D // H

    key = jax.random.PRNGKey(0)
    ks = jax.random.split(key, 12)

    x_q = jax.random.normal(ks[0], (B, S, D), jnp.float32)
    x_k = jax.random.normal(ks[1], (B, S, D), jnp.float32)
    x_v = jax.random.normal(ks[2], (B, S, D), jnp.float32)

    def init_linear(kw, kb, fan_in, fan_out):
        bound = 1.0 / math.sqrt(fan_in)
        w = jax.random.uniform(kw, (fan_out, fan_in), jnp.float32, -bound, bound)
        b = jax.random.uniform(kb, (fan_out,), jnp.float32, -bound, bound)
        return w, b

    Wq, bq = init_linear(ks[3], ks[4], D, D)
    Wk, bk = init_linear(ks[5], ks[6], D, D)
    Wv, bv = init_linear(ks[7], ks[8], D, D)
    Wo, bo = init_linear(ks[9], ks[10], D, D)
    pos_embedding = jax.random.normal(ks[11], (2 * MAX_POS + 1, Hd), jnp.float32)

    params = dict(Wq=Wq, bq=bq, Wk=Wk, bk=bk, Wv=Wv, bv=bv, Wo=Wo, bo=bo,
                  pos_embedding=pos_embedding)

    # Causal-style mask (True = masked), broadcast to (B, H, S, S).
    qi = jnp.arange(S)
    base_mask = qi[None, :] > qi[:, None]
    mask = jnp.broadcast_to(base_mask[None, None], (B, H, S, S))

    fwd = jax.jit(functools.partial(divided_attention_forward,
                                    heads=H, max_pos_len=MAX_POS))
    out = fwd(params, x_q, x_k, x_v, mask)
    out = jax.block_until_ready(out)

    ref = reference_forward(params, x_q, x_k, x_v, mask, H, MAX_POS)
    np.testing.assert_allclose(np.asarray(out), np.asarray(ref),
                               rtol=5e-5, atol=5e-5)

    print("KERNEL_OK")
</pallas_src>

<mosaic_0001>
module attributes {stable_mosaic.version = 11 : i64} {
  func.func @_linear_kernel(%arg0: i32, %arg1: memref<16x32xf32, #tpu.memory_space<vmem>>, %arg2: memref<32x32xf32, #tpu.memory_space<vmem>>, %arg3: memref<1x32xf32, #tpu.memory_space<vmem>>, %arg4: memref<16x32xf32, #tpu.memory_space<vmem>>) attributes {dimension_semantics = [#tpu.dimension_semantics<parallel>], iteration_bounds = array<i64: 1>, scalar_prefetch = 0 : i64, scratch_operands = 0 : i64, tpu.core_type = #tpu.core_type<tc>, window_params = [{transform_indices = @transform_0, window_bounds = array<i64: 16, 32>}, {pipeline_mode = #tpu.pipeline_mode<synchronous>, transform_indices = @transform_1, window_bounds = array<i64: 32, 32>}, {pipeline_mode = #tpu.pipeline_mode<synchronous>, transform_indices = @transform_2, window_bounds = array<i64: 1, 32>}, {transform_indices = @transform_3, window_bounds = array<i64: 16, 32>}]} {
    %c0 = arith.constant 0 : index
    %c0_0 = arith.constant 0 : index
    %0 = vector.load %arg1[%c0, %c0_0] : memref<16x32xf32, #tpu.memory_space<vmem>>, vector<16x32xf32>
    %c0_1 = arith.constant 0 : index
    %c0_2 = arith.constant 0 : index
    %1 = vector.load %arg2[%c0_1, %c0_2] : memref<32x32xf32, #tpu.memory_space<vmem>>, vector<32x32xf32>
    %cst = arith.constant dense<0.000000e+00> : vector<16x32xf32>
    %2 = tpu.matmul %0, %1, %cst {dimension_numbers = #tpu.dot_dimension_numbers<[1], [0], [0], [1], [0, 0, 1, 1], [], []>} : vector<16x32xf32>, vector<32x32xf32>, vector<16x32xf32> -> vector<16x32xf32>
    %c0_3 = arith.constant 0 : index
    %c0_4 = arith.constant 0 : index
    %3 = vector.load %arg3[%c0_3, %c0_4] : memref<1x32xf32, #tpu.memory_space<vmem>>, vector<1x32xf32>
    %4 = vector.broadcast %3 : vector<1x32xf32> to vector<16x32xf32>
    %5 = arith.addf %2, %4 : vector<16x32xf32>
    %c0_5 = arith.constant 0 : index
    %c0_6 = arith.constant 0 : index
    %6 = vector.load %arg4[%c0_5, %c0_6] : memref<16x32xf32, #tpu.memory_space<vmem>>, vector<16x32xf32>
    tpu.vector_store %arg4[%c0_5, %c0_6], %5 {strides = array<i32>} : memref<16x32xf32, #tpu.memory_space<vmem>>, vector<16x32xf32>,
    return
  }
  func.func @transform_0(%arg0: i32) -> (i32, i32) {
    %c0_i32 = arith.constant 0 : i32
    %c0_i32_0 = arith.constant 0 : i32
    return %arg0, %c0_i32 : i32, i32
  }
  func.func @transform_1(%arg0: i32) -> (i32, i32) {
    %c0_i32 = arith.constant 0 : i32
    %c0_i32_0 = arith.constant 0 : i32
    %c0_i32_1 = arith.constant 0 : i32
    return %c0_i32, %c0_i32_0 : i32, i32
  }
  func.func @transform_2(%arg0: i32) -> (i32, i32) {
    %c0_i32 = arith.constant 0 : i32
    %c0_i32_0 = arith.constant 0 : i32
    %c0_i32_1 = arith.constant 0 : i32
    return %c0_i32, %c0_i32_0 : i32, i32
  }
  func.func @transform_3(%arg0: i32) -> (i32, i32) {
    %c0_i32 = arith.constant 0 : i32
    %c0_i32_0 = arith.constant 0 : i32
    return %arg0, %c0_i32 : i32, i32
  }
}

module attributes {stable_mosaic.version = 11 : i64} {
  func.func @_linear_kernel(%arg0: i32, %arg1: memref<16x32xf32, #tpu.memory_space<vmem>>, %arg2: memref<32x32xf32, #tpu.memory_space<vmem>>, %arg3: memref<1x32xf32, #tpu.memory_space<vmem>>, %arg4: memref<16x32xf32, #tpu.memory_space<vmem>>) attributes {dimension_semantics = [#tpu.dimension_semantics<parallel>], iteration_bounds = array<i64: 1>, scalar_prefetch = 0 : i64, scratch_operands = 0 : i64, tpu.core_type = #tpu.core_type<tc>, window_params = [{transform_indices = @transform_0, window_bounds = array<i64: 16, 32>}, {pipeline_mode = #tpu.pipeline_mode<synchronous>, transform_indices = @transform_1, window_bounds = array<i64: 32, 32>}, {pipeline_mode = #tpu.pipeline_mode<synchronous>, transform_indices = @transform_2, window_bounds = array<i64: 1, 32>}, {transform_indices = @transform_3, window_bounds = array<i64: 16, 32>}]} {
    %c0 = arith.constant 0 : index
    %c0_0 = arith.constant 0 : index
    %0 = vector.load %arg1[%c0, %c0_0] : memref<16x32xf32, #tpu.memory_space<vmem>>, vector<16x32xf32>
    %c0_1 = arith.constant 0 : index
    %c0_2 = arith.constant 0 : index
    %1 = vector.load %arg2[%c0_1, %c0_2] : memref<32x32xf32, #tpu.memory_space<vmem>>, vector<32x32xf32>
    %cst = arith.constant dense<0.000000e+00> : vector<16x32xf32>
    %2 = tpu.matmul %0, %1, %cst {dimension_numbers = #tpu.dot_dimension_numbers<[1], [0], [0], [1], [0, 0, 1, 1], [], []>} : vector<16x32xf32>, vector<32x32xf32>, vector<16x32xf32> -> vector<16x32xf32>
    %c0_3 = arith.constant 0 : index
    %c0_4 = arith.constant 0 : index
    %3 = vector.load %arg3[%c0_3, %c0_4] : memref<1x32xf32, #tpu.memory_space<vmem>>, vector<1x32xf32>
    %4 = vector.broadcast %3 : vector<1x32xf32> to vector<16x32xf32>
    %5 = arith.addf %2, %4 : vector<16x32xf32>
    %c0_5 = arith.constant 0 : index
    %c0_6 = arith.constant 0 : index
    %6 = vector.load %arg4[%c0_5, %c0_6] : memref<16x32xf32, #tpu.memory_space<vmem>>, vector<16x32xf32>
    tpu.vector_store %arg4[%c0_5, %c0_6], %5 {strides = array<i32>} : memref<16x32xf32, #tpu.memory_space<vmem>>, vector<16x32xf32>,
    return
  }
  func.func @transform_0(%arg0: i32) -> (i32, i32) {
    %c0_i32 = arith.constant 0 : i32
    %c0_i32_0 = arith.constant 0 : i32
    return %arg0, %c0_i32 : i32, i32
  }
  func.func @transform_1(%arg0: i32) -> (i32, i32) {
    %c0_i32 = arith.constant 0 : i32
    %c0_i32_0 = arith.constant 0 : i32
    %c0_i32_1 = arith.constant 0 : i32
    return %c0_i32, %c0_i32_0 : i32, i32
  }
  func.func @transform_2(%arg0: i32) -> (i32, i32) {
    %c0_i32 = arith.constant 0 : i32
    %c0_i32_0 = arith.constant 0 : i32
    %c0_i32_1 = arith.constant 0 : i32
    return %c0_i32, %c0_i32_0 : i32, i32
  }
  func.func @transform_3(%arg0: i32) -> (i32, i32) {
    %c0_i32 = arith.constant 0 : i32
    %c0_i32_0 = arith.constant 0 : i32
    return %arg0, %c0_i32 : i32, i32
  }
}

module attributes {stable_mosaic.version = 11 : i64} {
  func.func @_attn_kernel(%arg0: i32, %arg1: memref<1x8x4x8xf32, #tpu.memory_space<vmem>>, %arg2: memref<1x8x4x8xf32, #tpu.memory_space<vmem>>, %arg3: memref<1x8x4x8xf32, #tpu.memory_space<vmem>>, %arg4: memref<8x15xf32, #tpu.memory_space<vmem>>, %arg5: memref<1x4x8x8xi8, #tpu.memory_space<vmem>>, %arg6: memref<1x8x4x8xf32, #tpu.memory_space<vmem>>) attributes {dimension_semantics = [#tpu.dimension_semantics<parallel>], iteration_bounds = array<i64: 2>, scalar_prefetch = 0 : i64, scratch_operands = 0 : i64, tpu.core_type = #tpu.core_type<tc>, window_params = [{transform_indices = @transform_0, window_bounds = array<i64: 1, 8, 4, 8>}, {transform_indices = @transform_1, window_bounds = array<i64: 1, 8, 4, 8>}, {transform_indices = @transform_2, window_bounds = array<i64: 1, 8, 4, 8>}, {pipeline_mode = #tpu.pipeline_mode<synchronous>, transform_indices = @transform_3, window_bounds = array<i64: 8, 15>}, {transform_indices = @transform_4, window_bounds = array<i64: 1, 4, 8, 8>}, {transform_indices = @transform_5, window_bounds = array<i64: 1, 8, 4, 8>}]} {
    %c0 = arith.constant 0 : index
    %c0_0 = arith.constant 0 : index
    %0 = vector.load %arg4[%c0, %c0_0] : memref<8x15xf32, #tpu.memory_space<vmem>>, vector<8x15xf32>
    %c0_1 = arith.constant 0 : index
    %c0_2 = arith.constant 0 : index
    %c0_3 = arith.constant 0 : index
    %c0_4 = arith.constant 0 : index
    %1 = vector.load %arg1[%c0_1, %c0_2, %c0_3, %c0_4] : memref<1x8x4x8xf32, #tpu.memory_space<vmem>>, vector<1x8x1x8xf32>
    %2 = vector.shape_cast %1 : vector<1x8x1x8xf32> to vector<8x8xf32>
    %cst = arith.constant 0.353553385 : f32
    %3 = vector.broadcast %cst : f32 to vector<8x8xf32>
    %4 = arith.mulf %2, %3 : vector<8x8xf32>
    %c0_5 = arith.constant 0 : index
    %c0_6 = arith.constant 0 : index
    %c0_7 = arith.constant 0 : index
    %c0_8 = arith.constant 0 : index
    %5 = vector.load %arg2[%c0_5, %c0_6, %c0_7, %c0_8] : memref<1x8x4x8xf32, #tpu.memory_space<vmem>>, vector<1x8x1x8xf32>
    %6 = vector.shape_cast %5 : vector<1x8x1x8xf32> to vector<8x8xf32>
    %c0_9 = arith.constant 0 : index
    %c0_10 = arith.constant 0 : index
    %c0_11 = arith.constant 0 : index
    %c0_12 = arith.constant 0 : index
    %7 = vector.load %arg3[%c0_9, %c0_10, %c0_11, %c0_12] : memref<1x8x4x8xf32, #tpu.memory_space<vmem>>, vector<1x8x1x8xf32>
    %8 = vector.shape_cast %7 : vector<1x8x1x8xf32> to vector<8x8xf32>
    %cst_13 = arith.constant dense<0.000000e+00> : vector<8x8xf32>
    %9 = tpu.matmul %4, %6, %cst_13 {dimension_numbers = #tpu.dot_dimension_numbers<[1], [1], [0], [0], [0, 0, 1, 0], [], []>} : vector<8x8xf32>, vector<8x8xf32>, vector<8x8xf32> -> vector<8x8xf32>
    %cst_14 = arith.constant dense<0.000000e+00> : vector<8x15xf32>
    %10 = tpu.matmul %4, %0, %cst_14 {dimension_numbers = #tpu.dot_dimension_numbers<[1], [0], [0], [1], [0, 0, 1, 1], [], []>} : vector<8x8xf32>, vector<8x15xf32>, vector<8x15xf32> -> vector<8x15xf32>
    %11 = vector.extract_strided_slice %10 {offsets = [0, 7], sizes = [1, 8], strides = [1, 1]} : vector<8x15xf32> to vector<1x8xf32>
    %12 = vector.extract_strided_slice %10 {offsets = [1, 6], sizes = [1, 8], strides = [1, 1]} : vector<8x15xf32> to vector<1x8xf32>
    %13 = vector.extract_strided_slice %10 {offsets = [2, 5], sizes = [1, 8], strides = [1, 1]} : vector<8x15xf32> to vector<1x8xf32>
    %14 = vector.extract_strided_slice %10 {offsets = [3, 4], sizes = [1, 8], strides = [1, 1]} : vector<8x15xf32> to vector<1x8xf32>
    %15 = vector.extract_strided_slice %10 {offsets = [4, 3], sizes = [1, 8], strides = [1, 1]} : vector<8x15xf32> to vector<1x8xf32>
    %16 = vector.extract_strided_slice %10 {offsets = [5, 2], sizes = [1, 8], strides = [1, 1]} : vector<8x15xf32> to vector<1x8xf32>
    %17 = vector.extract_strided_slice %10 {offsets = [6, 1], sizes = [1, 8], strides = [1, 1]} : vector<8x15xf32> to vector<1x8xf32>
    %18 = vector.extract_strided_slice %10 {offsets = [7, 0], sizes = [1, 8], strides = [1, 1]} : vector<8x15xf32> to vector<1x8xf32>
    %19 = tpu.concatenate %11, %12, %13, %14, %15, %16, %17, %18 in 0 : vector<1x8xf32>, vector<1x8xf32>, vector<1x8xf32>, vector<1x8xf32>, vector<1x8xf32>, vector<1x8xf32>, vector<1x8xf32>, vector<1x8xf32> -> vector<8x8xf32>
    %20 = arith.addf %9, %19 : vector<8x8xf32>
    %c0_15 = arith.constant 0 : index
    %c0_16 = arith.constant 0 : index
    %c0_17 = arith.constant 0 : index
    %c0_18 = arith.constant 0 : index
    %21 = vector.load %arg5[%c0_15, %c0_16, %c0_17, %c0_18] : memref<1x4x8x8xi8, #tpu.memory_space<vmem>>, vector<1x1x8x8xi8>
    %22 = vector.shape_cast %21 : vector<1x1x8x8xi8> to vector<8x8xi8>
    %23 = arith.sitofp %22 : vector<8x8xi8> to vector<8x8xf32>
    %cst_19 = arith.constant 5.000000e-01 : f32
    %24 = vector.broadcast %cst_19 : f32 to vector<8x8xf32>
    %25 = arith.cmpf ogt, %23, %24 : vector<8x8xf32>
    %cst_20 = arith.constant -1.000000e+30 : f32
    %26 = vector.broadcast %cst_20 : f32 to vector<8x8xf32>
    %27 = arith.select %25, %26, %20 : vector<8x8xi1>, vector<8x8xf32>
    %cst_21 = arith.constant dense<0xFF800000> : vector<8xf32>
    %28 = vector.multi_reduction <maximumf>, %27, %cst_21 [1] : vector<8x8xf32> to vector<8xf32>
    %29 = vector.shape_cast %28 : vector<8xf32> to vector<8x1xf32>
    %30 = vector.broadcast %29 : vector<8x1xf32> to vector<8x8xf32>
    %31 = arith.subf %27, %30 : vector<8x8xf32>
    %32 = math.exp %31 : vector<8x8xf32>
    %cst_22 = arith.constant dense<0.000000e+00> : vector<8xf32>
    %33 = vector.multi_reduction <add>, %32, %cst_22 [1] : vector<8x8xf32> to vector<8xf32>
    %34 = vector.shape_cast %33 : vector<8xf32> to vector<8x1xf32>
    %35 = tpu.reciprocal %34 : vector<8x1xf32> -> vector<8x1xf32>
    %36 = vector.broadcast %35 : vector<8x1xf32> to vector<8x8xf32>
    %37 = arith.mulf %32, %36 : vector<8x8xf32>
    %cst_23 = arith.constant dense<0.000000e+00> : vector<8x8xf32>
    %38 = tpu.matmul %37, %8, %cst_23 {dimension_numbers = #tpu.dot_dimension_numbers<[1], [0], [0], [1], [0, 0, 1, 1], [], []>} : vector<8x8xf32>, vector<8x8xf32>, vector<8x8xf32> -> vector<8x8xf32>
    %c0_24 = arith.constant 0 : index
    %c0_25 = arith.constant 0 : index
    %c0_26 = arith.constant 0 : index
    %c0_27 = arith.constant 0 : index
    %39 = vector.load %arg6[%c0_24, %c0_25, %c0_26, %c0_27] : memref<1x8x4x8xf32, #tpu.memory_space<vmem>>, vector<1x8x1x8xf32>
    %40 = vector.shape_cast %39 : vector<1x8x1x8xf32> to vector<8x8xf32>
    %41 = vector.shape_cast %38 : vector<8x8xf32> to vector<1x8x1x8xf32>
    tpu.vector_store %arg6[%c0_24, %c0_25, %c0_26, %c0_27], %41 {strides = array<i32>} : memref<1x8x4x8xf32, #tpu.memory_space<vmem>>, vector<1x8x1x8xf32>,
    %c0_28 = arith.constant 0 : index
    %c0_29 = arith.constant 0 : index
    %c1 = arith.constant 1 : index
    %c0_30 = arith.constant 0 : index
    %42 = vector.load %arg1[%c0_28, %c0_29, %c1, %c0_30] : memref<1x8x4x8xf32, #tpu.memory_space<vmem>>, vector<1x8x1x8xf32>
    %43 = vector.shape_cast %42 : vector<1x8x1x8xf32> to vector<8x8xf32>
    %cst_31 = arith.constant 0.353553385 : f32
    %44 = vector.broadcast %cst_31 : f32 to vector<8x8xf32>
    %45 = arith.mulf %43, %44 : vector<8x8xf32>
    %c0_32 = arith.constant 0 : index
    %c0_33 = arith.constant 0 : index
    %c1_34 = arith.constant 1 : index
    %c0_35 = arith.constant 0 : index
    %46 = vector.load %arg2[%c0_32, %c0_33, %c1_34, %c0_35] : memref<1x8x4x8xf32, #tpu.memory_space<vmem>>, vector<1x8x1x8xf32>
    %47 = vector.shape_cast %46 : vector<1x8x1x8xf32> to vector<8x8xf32>
    %c0_36 = arith.constant 0 : index
    %c0_37 = arith.constant 0 : index
    %c1_38 = arith.constant 1 : index
    %c0_39 = arith.constant 0 : index
    %48 = vector.load %arg3[%c0_36, %c0_37, %c1_38, %c0_39] : memref<1x8x4x8xf32, #tpu.memory_space<vmem>>, vector<1x8x1x8xf32>
    %49 = vector.shape_cast %48 : vector<1x8x1x8xf32> to vector<8x8xf32>
    %cst_40 = arith.constant dense<0.000000e+00> : vector<8x8xf32>
    %50 = tpu.matmul %45, %47, %cst_40 {dimension_numbers = #tpu.dot_dimension_numbers<[1], [1], [0], [0], [0, 0, 1, 0], [], []>} : vector<8x8xf32>, vector<8x8xf32>, vector<8x8xf32> -> vector<8x8xf32>
    %cst_41 = arith.constant dense<0.000000e+00> : vector<8x15xf32>
    %51 = tpu.matmul %45, %0, %cst_41 {dimension_numbers = #tpu.dot_dimension_numbers<[1], [0], [0], [1], [0, 0, 1, 1], [], []>} : vector<8x8xf32>, vector<8x15xf32>, vector<8x15xf32> -> vector<8x15xf32>
    %52 = vector.extract_strided_slice %51 {offsets = [0, 7], sizes = [1, 8], strides = [1, 1]} : vector<8x15xf32> to vector<1x8xf32>
    %53 = vector.extract_strided_slice %51 {offsets = [1, 6], sizes = [1, 8], strides = [1, 1]} : vector<8x15xf32> to vector<1x8xf32>
    %54 = vector.extract_strided_slice %51 {offsets = [2, 5], sizes = [1, 8], strides = [1, 1]} : vector<8x15xf32> to vector<1x8xf32>
    %55 = vector.extract_strided_slice %51 {offsets = [3, 4], sizes = [1, 8], strides = [1, 1]} : vector<8x15xf32> to vector<1x8xf32>
    %56 = vector.extract_strided_slice %51 {offsets = [4, 3], sizes = [1, 8], strides = [1, 1]} : vector<8x15xf32> to vector<1x8xf32>
    %57 = vector.extract_strided_slice %51 {offsets = [5, 2], sizes = [1, 8], strides = [1, 1]} : vector<8x15xf32> to vector<1x8xf32>
    %58 = vector.extract_strided_slice %51 {offsets = [6, 1], sizes = [1, 8], strides = [1, 1]} : vector<8x15xf32> to vector<1x8xf32>
    %59 = vector.extract_strided_slice %51 {offsets = [7, 0], sizes = [1, 8], strides = [1, 1]} : vector<8x15xf32> to vector<1x8xf32>
    %60 = tpu.concatenate %52, %53, %54, %55, %56, %57, %58, %59 in 0 : vector<1x8xf32>, vector<1x8xf32>, vector<1x8xf32>, vector<1x8xf32>, vector<1x8xf32>, vector<1x8xf32>, vector<1x8xf32>, vector<1x8xf32> -> vector<8x8xf32>
    %61 = arith.addf %50, %60 : vector<8x8xf32>
    %c0_42 = arith.constant 0 : index
    %c1_43 = arith.constant 1 : index
    %c0_44 = arith.constant 0 : index
    %c0_45 = arith.constant 0 : index
    %62 = vector.load %arg5[%c0_42, %c1_43, %c0_44, %c0_45] : memref<1x4x8x8xi8, #tpu.memory_space<vmem>>, vector<1x1x8x8xi8>
    %63 = vector.shape_cast %62 : vector<1x1x8x8xi8> to vector<8x8xi8>
    %64 = arith.sitofp %63 : vector<8x8xi8> to vector<8x8xf32>
    %cst_46 = arith.constant 5.000000e-01 : f32
    %65 = vector.broadcast %cst_46 : f32 to vector<8x8xf32>
    %66 = arith.cmpf ogt, %64, %65 : vector<8x8xf32>
    %cst_47 = arith.constant -1.000000e+30 : f32
    %67 = vector.broadcast %cst_47 : f32 to vector<8x8xf32>
    %68 = arith.select %66, %67, %61 : vector<8x8xi1>, vector<8x8xf32>
    %cst_48 = arith.constant dense<0xFF800000> : vector<8xf32>
    %69 = vector.multi_reduction <maximumf>, %68, %cst_48 [1] : vector<8x8xf32> to vector<8xf32>
    %70 = vector.shape_cast %69 : vector<8xf32> to vector<8x1xf32>
    %71 = vector.broadcast %70 : vector<8x1xf32> to vector<8x8xf32>
    %72 = arith.subf %68, %71 : vector<8x8xf32>
    %73 = math.exp %72 : vector<8x8xf32>
    %cst_49 = arith.constant dense<0.000000e+00> : vector<8xf32>
    %74 = vector.multi_reduction <add>, %73, %cst_49 [1] : vector<8x8xf32> to vector<8xf32>
    %75 = vector.shape_cast %74 : vector<8xf32> to vector<8x1xf32>
    %76 = tpu.reciprocal %75 : vector<8x1xf32> -> vector<8x1xf32>
    %77 = vector.broadcast %76 : vector<8x1xf32> to vector<8x8xf32>
    %78 = arith.mulf %73, %77 : vector<8x8xf32>
    %cst_50 = arith.constant dense<0.000000e+00> : vector<8x8xf32>
    %79 = tpu.matmul %78, %49, %cst_50 {dimension_numbers = #tpu.dot_dimension_numbers<[1], [0], [0], [1], [0, 0, 1, 1], [], []>} : vector<8x8xf32>, vector<8x8xf32>, vector<8x8xf32> -> vector<8x8xf32>
    %c0_51 = arith.constant 0 : index
    %c0_52 = arith.constant 0 : index
    %c1_53 = arith.constant 1 : index
    %c0_54 = arith.constant 0 : index
    %80 = vector.load %arg6[%c0_51, %c0_52, %c1_53, %c0_54] : memref<1x8x4x8xf32, #tpu.memory_space<vmem>>, vector<1x8x1x8xf32>
    %81 = vector.shape_cast %80 : vector<1x8x1x8xf32> to vector<8x8xf32>
    %82 = vector.shape_cast %79 : vector<8x8xf32> to vector<1x8x1x8xf32>
    tpu.vector_store %arg6[%c0_51, %c0_52, %c1_53, %c0_54], %82 {strides = array<i32>} : memref<1x8x4x8xf32, #tpu.memory_space<vmem>>, vector<1x8x1x8xf32>,
    %c0_55 = arith.constant 0 : index
    %c0_56 = arith.constant 0 : index
    %c2 = arith.constant 2 : index
    %c0_57 = arith.constant 0 : index
    %83 = vector.load %arg1[%c0_55, %c0_56, %c2, %c0_57] : memref<1x8x4x8xf32, #tpu.memory_space<vmem>>, vector<1x8x1x8xf32>
    %84 = vector.shape_cast %83 : vector<1x8x1x8xf32> to vector<8x8xf32>
    %cst_58 = arith.constant 0.353553385 : f32
    %85 = vector.broadcast %cst_58 : f32 to vector<8x8xf32>
    %86 = arith.mulf %84, %85 : vector<8x8xf32>
    %c0_59 = arith.constant 0 : index
    %c0_60 = arith.constant 0 : index
    %c2_61 = arith.constant 2 : index
    %c0_62 = arith.constant 0 : index
    %87 = vector.load %arg2[%c0_59, %c0_60, %c2_61, %c0_62] : memref<1x8x4x8xf32, #tpu.memory_space<vmem>>, vector<1x8x1x8xf32>
    %88 = vector.shape_cast %87 : vector<1x8x1x8xf32> to vector<8x8xf32>
    %c0_63 = arith.constant 0 : index
    %c0_64 = arith.constant 0 : index
    %c2_65 = arith.constant 2 : index
    %c0_66 = arith.constant 0 : index
    %89 = vector.load %arg3[%c0_63, %c0_64, %c2_65, %c0_66] : memref<1x8x4x8xf32, #tpu.memory_space<vmem>>, vector<1x8x1x8xf32>
    %90 = vector.shape_cast %89 : vector<1x8x1x8xf32> to vector<8x8xf32>
    %cst_67 = arith.constant dense<0.000000e+00> : vector<8x8xf32>
    %91 = tpu.matmul %86, %88, %cst_67 {dimension_numbers = #tpu.dot_dimension_numbers<[1], [1], [0], [0], [0, 0, 1, 0], [], []>} : vector<8x8xf32>, vector<8x8xf32>, vector<8x8xf32> -> vector<8x8xf32>
    %cst_68 = arith.constant dense<0.000000e+00> : vector<8x15xf32>
    %92 = tpu.matmul %86, %0, %cst_68 {dimension_numbers = #tpu.dot_dimension_numbers<[1], [0], [0], [1], [0, 0, 1, 1], [], []>} : vector<8x8xf32>, vector<8x15xf32>, vector<8x15xf32> -> vector<8x15xf32>
    %93 = vector.extract_strided_slice %92 {offsets = [0, 7], sizes = [1, 8], strides = [1, 1]} : vector<8x15xf32> to vector<1x8xf32>
    %94 = vector.extract_strided_slice %92 {offsets = [1, 6], sizes = [1, 8], strides = [1, 1]} : vector<8x15xf32> to vector<1x8xf32>
    %95 = vector.extract_strided_slice %92 {offsets = [2, 5], sizes = [1, 8], strides = [1, 1]} : vector<8x15xf32> to vector<1x8xf32>
    %96 = vector.extract_strided_slice %92 {offsets = [3, 4], sizes = [1, 8], strides = [1, 1]} : vector<8x15xf32> to vector<1x8xf32>
    %97 = vector.extract_strided_slice %92 {offsets = [4, 3], sizes = [1, 8], strides = [1, 1]} : vector<8x15xf32> to vector<1x8xf32>
    %98 = vector.extract_strided_slice %92 {offsets = [5, 2], sizes = [1, 8], strides = [1, 1]} : vector<8x15xf32> to vector<1x8xf32>
    %99 = vector.extract_strided_slice %92 {offsets = [6, 1], sizes = [1, 8], strides = [1, 1]} : vector<8x15xf32> to vector<1x8xf32>
    %100 = vector.extract_strided_slice %92 {offsets = [7, 0], sizes = [1, 8], strides = [1, 1]} : vector<8x15xf32> to vector<1x8xf32>
    %101 = tpu.concatenate %93, %94, %95, %96, %97, %98, %99, %100 in 0 : vector<1x8xf32>, vector<1x8xf32>, vector<1x8xf32>, vector<1x8xf32>, vector<1x8xf32>, vector<1x8xf32>, vector<1x8xf32>, vector<1x8xf32> -> vector<8x8xf32>
    %102 = arith.addf %91, %101 : vector<8x8xf32>
    %c0_69 = arith.constant 0 : index
    %c2_70 = arith.constant 2 : index
    %c0_71 = arith.constant 0 : index
    %c0_72 = arith.constant 0 : index
    %103 = vector.load %arg5[%c0_69, %c2_70, %c0_71, %c0_72] : memref<1x4x8x8xi8, #tpu.memory_space<vmem>>, vector<1x1x8x8xi8>
    %104 = vector.shape_cast %103 : vector<1x1x8x8xi8> to vector<8x8xi8>
    %105 = arith.sitofp %104 : vector<8x8xi8> to vector<8x8xf32>
    %cst_73 = arith.constant 5.000000e-01 : f32
    %106 = vector.broadcast %cst_73 : f32 to vector<8x8xf32>
    %107 = arith.cmpf ogt, %105, %106 : vector<8x8xf32>
    %cst_74 = arith.constant -1.000000e+30 : f32
    %108 = vector.broadcast %cst_74 : f32 to vector<8x8xf32>
    %109 = arith.select %107, %108, %102 : vector<8x8xi1>, vector<8x8xf32>
    %cst_75 = arith.constant dense<0xFF800000> : vector<8xf32>
    %110 = vector.multi_reduction <maximumf>, %109, %cst_75 [1] : vector<8x8xf32> to vector<8xf32>
    %111 = vector.shape_cast %110 : vector<8xf32> to vector<8x1xf32>
    %112 = vector.broadcast %111 : vector<8x1xf32> to vector<8x8xf32>
    %113 = arith.subf %109, %112 : vector<8x8xf32>
    %114 = math.exp %113 : vector<8x8xf32>
    %cst_76 = arith.constant dense<0.000000e+00> : vector<8xf32>
    %115 = vector.multi_reduction <add>, %114, %cst_76 [1] : vector<8x8xf32> to vector<8xf32>
    %116 = vector.shape_cast %115 : vector<8xf32> to vector<8x1xf32>
    %117 = tpu.reciprocal %116 : vector<8x1xf32> -> vector<8x1xf32>
    %118 = vector.broadcast %117 : vector<8x1xf32> to vector<8x8xf32>
    %119 = arith.mulf %114, %118 : vector<8x8xf32>
    %cst_77 = arith.constant dense<0.000000e+00> : vector<8x8xf32>
    %120 = tpu.matmul %119, %90, %cst_77 {dimension_numbers = #tpu.dot_dimension_numbers<[1], [0], [0], [1], [0, 0, 1, 1], [], []>} : vector<8x8xf32>, vector<8x8xf32>, vector<8x8xf32> -> vector<8x8xf32>
    %c0_78 = arith.constant 0 : index
    %c0_79 = arith.constant 0 : index
    %c2_80 = arith.constant 2 : index
    %c0_81 = arith.constant 0 : index
    %121 = vector.load %arg6[%c0_78, %c0_79, %c2_80, %c0_81] : memref<1x8x4x8xf32, #tpu.memory_space<vmem>>, vector<1x8x1x8xf32>
    %122 = vector.shape_cast %121 : vector<1x8x1x8xf32> to vector<8x8xf32>
    %123 = vector.shape_cast %120 : vector<8x8xf32> to vector<1x8x1x8xf32>
    tpu.vector_store %arg6[%c0_78, %c0_79, %c2_80, %c0_81], %123 {strides = array<i32>} : memref<1x8x4x8xf32, #tpu.memory_space<vmem>>, vector<1x8x1x8xf32>,
    %c0_82 = arith.constant 0 : index
    %c0_83 = arith.constant 0 : index
    %c3 = arith.constant 3 : index
    %c0_84 = arith.constant 0 : index
    %124 = vector.load %arg1[%c0_82, %c0_83, %c3, %c0_84] : memref<1x8x4x8xf32, #tpu.memory_space<vmem>>, vector<1x8x1x8xf32>
    %125 = vector.shape_cast %124 : vector<1x8x1x8xf32> to vector<8x8xf32>
    %cst_85 = arith.constant 0.353553385 : f32
    %126 = vector.broadcast %cst_85 : f32 to vector<8x8xf32>
    %127 = arith.mulf %125, %126 : vector<8x8xf32>
    %c0_86 = arith.constant 0 : index
    %c0_87 = arith.constant 0 : index
    %c3_88 = arith.constant 3 : index
    %c0_89 = arith.constant 0 : index
    %128 = vector.load %arg2[%c0_86, %c0_87, %c3_88, %c0_89] : memref<1x8x4x8xf32, #tpu.memory_space<vmem>>, vector<1x8x1x8xf32>
    %129 = vector.shape_cast %128 : vector<1x8x1x8xf32> to vector<8x8xf32>
    %c0_90 = arith.constant 0 : index
    %c0_91 = arith.constant 0 : index
    %c3_92 = arith.constant 3 : index
    %c0_93 = arith.constant 0 : index
    %130 = vector.load %arg3[%c0_90, %c0_91, %c3_92, %c0_93] : memref<1x8x4x8xf32, #tpu.memory_space<vmem>>, vector<1x8x1x8xf32>
    %131 = vector.shape_cast %130 : vector<1x8x1x8xf32> to vector<8x8xf32>
    %cst_94 = arith.constant dense<0.000000e+00> : vector<8x8xf32>
    %132 = tpu.matmul %127, %129, %cst_94 {dimension_numbers = #tpu.dot_dimension_numbers<[1], [1], [0], [0], [0, 0, 1, 0], [], []>} : vector<8x8xf32>, vector<8x8xf32>, vector<8x8xf32> -> vector<8x8xf32>
    %cst_95 = arith.constant dense<0.000000e+00> : vector<8x15xf32>
    %133 = tpu.matmul %127, %0, %cst_95 {dimension_numbers = #tpu.dot_dimension_numbers<[1], [0], [0], [1], [0, 0, 1, 1], [], []>} : vector<8x8xf32>, vector<8x15xf32>, vector<8x15xf32> -> vector<8x15xf32>
    %134 = vector.extract_strided_slice %133 {offsets = [0, 7], sizes = [1, 8], strides = [1, 1]} : vector<8x15xf32> to vector<1x8xf32>
    %135 = vector.extract_strided_slice %133 {offsets = [1, 6], sizes = [1, 8], strides = [1, 1]} : vector<8x15xf32> to vector<1x8xf32>
    %136 = vector.extract_strided_slice %133 {offsets = [2, 5], sizes = [1, 8], strides = [1, 1]} : vector<8x15xf32> to vector<1x8xf32>
    %137 = vector.extract_strided_slice %133 {offsets = [3, 4], sizes = [1, 8], strides = [1, 1]} : vector<8x15xf32> to vector<1x8xf32>
    %138 = vector.extract_strided_slice %133 {offsets = [4, 3], sizes = [1, 8], strides = [1, 1]} : vector<8x15xf32> to vector<1x8xf32>
    %139 = vector.extract_strided_slice %133 {offsets = [5, 2], sizes = [1, 8], strides = [1, 1]} : vector<8x15xf32> to vector<1x8xf32>
    %140 = vector.extract_strided_slice %133 {offsets = [6, 1], sizes = [1, 8], strides = [1, 1]} : vector<8x15xf32> to vector<1x8xf32>
    %141 = vector.extract_strided_slice %133 {offsets = [7, 0], sizes = [1, 8], strides = [1, 1]} : vector<8x15xf32> to vector<1x8xf32>
    %142 = tpu.concatenate %134, %135, %136, %137, %138, %139, %140, %141 in 0 : vector<1x8xf32>, vector<1x8xf32>, vector<1x8xf32>, vector<1x8xf32>, vector<1x8xf32>, vector<1x8xf32>, vector<1x8xf32>, vector<1x8xf32> -> vector<8x8xf32>
    %143 = arith.addf %132, %142 : vector<8x8xf32>
    %c0_96 = arith.constant 0 : index
    %c3_97 = arith.constant 3 : index
    %c0_98 = arith.constant 0 : index
    %c0_99 = arith.constant 0 : index
    %144 = vector.load %arg5[%c0_96, %c3_97, %c0_98, %c0_99] : memref<1x4x8x8xi8, #tpu.memory_space<vmem>>, vector<1x1x8x8xi8>
    %145 = vector.shape_cast %144 : vector<1x1x8x8xi8> to vector<8x8xi8>
    %146 = arith.sitofp %145 : vector<8x8xi8> to vector<8x8xf32>
    %cst_100 = arith.constant 5.000000e-01 : f32
    %147 = vector.broadcast %cst_100 : f32 to vector<8x8xf32>
    %148 = arith.cmpf ogt, %146, %147 : vector<8x8xf32>
    %cst_101 = arith.constant -1.000000e+30 : f32
    %149 = vector.broadcast %cst_101 : f32 to vector<8x8xf32>
    %150 = arith.select %148, %149, %143 : vector<8x8xi1>, vector<8x8xf32>
    %cst_102 = arith.constant dense<0xFF800000> : vector<8xf32>
    %151 = vector.multi_reduction <maximumf>, %150, %cst_102 [1] : vector<8x8xf32> to vector<8xf32>
    %152 = vector.shape_cast %151 : vector<8xf32> to vector<8x1xf32>
    %153 = vector.broadcast %152 : vector<8x1xf32> to vector<8x8xf32>
    %154 = arith.subf %150, %153 : vector<8x8xf32>
    %155 = math.exp %154 : vector<8x8xf32>
    %cst_103 = arith.constant dense<0.000000e+00> : vector<8xf32>
    %156 = vector.multi_reduction <add>, %155, %cst_103 [1] : vector<8x8xf32> to vector<8xf32>
    %157 = vector.shape_cast %156 : vector<8xf32> to vector<8x1xf32>
    %158 = tpu.reciprocal %157 : vector<8x1xf32> -> vector<8x1xf32>
    %159 = vector.broadcast %158 : vector<8x1xf32> to vector<8x8xf32>
    %160 = arith.mulf %155, %159 : vector<8x8xf32>
    %cst_104 = arith.constant dense<0.000000e+00> : vector<8x8xf32>
    %161 = tpu.matmul %160, %131, %cst_104 {dimension_numbers = #tpu.dot_dimension_numbers<[1], [0], [0], [1], [0, 0, 1, 1], [], []>} : vector<8x8xf32>, vector<8x8xf32>, vector<8x8xf32> -> vector<8x8xf32>
    %c0_105 = arith.constant 0 : index
    %c0_106 = arith.constant 0 : index
    %c3_107 = arith.constant 3 : index
    %c0_108 = arith.constant 0 : index
    %162 = vector.load %arg6[%c0_105, %c0_106, %c3_107, %c0_108] : memref<1x8x4x8xf32, #tpu.memory_space<vmem>>, vector<1x8x1x8xf32>
    %163 = vector.shape_cast %162 : vector<1x8x1x8xf32> to vector<8x8xf32>
    %164 = vector.shape_cast %161 : vector<8x8xf32> to vector<1x8x1x8xf32>
    tpu.vector_store %arg6[%c0_105, %c0_106, %c3_107, %c0_108], %164 {strides = array<i32>} : memref<1x8x4x8xf32, #tpu.memory_space<vmem>>, vector<1x8x1x8xf32>,
    return
  }
  func.func @transform_0(%arg0: i32) -> (i32, i32, i32, i32) {
    %c0_i32 = arith.constant 0 : i32
    %c0_i32_0 = arith.constant 0 : i32
    %c0_i32_1 = arith.constant 0 : i32
    %c0_i32_2 = arith.constant 0 : i32
    return %arg0, %c0_i32, %c0_i32_0, %c0_i32_1 : i32, i32, i32, i32
  }
  func.func @transform_1(%arg0: i32) -> (i32, i32, i32, i32) {
    %c0_i32 = arith.constant 0 : i32
    %c0_i32_0 = arith.constant 0 : i32
    %c0_i32_1 = arith.constant 0 : i32
    %c0_i32_2 = arith.constant 0 : i32
    return %arg0, %c0_i32, %c0_i32_0, %c0_i32_1 : i32, i32, i32, i32
  }
  func.func @transform_2(%arg0: i32) -> (i32, i32, i32, i32) {
    %c0_i32 = arith.constant 0 : i32
    %c0_i32_0 = arith.constant 0 : i32
    %c0_i32_1 = arith.constant 0 : i32
    %c0_i32_2 = arith.constant 0 : i32
    return %arg0, %c0_i32, %c0_i32_0, %c0_i32_1 : i32, i32, i32, i32
  }
  func.func @transform_3(%arg0: i32) -> (i32, i32) {
    %c0_i32 = arith.constant 0 : i32
    %c0_i32_0 = arith.constant 0 : i32
    %c0_i32_1 = arith.constant 0 : i32
    return %c0_i32, %c0_i32_0 : i32, i32
  }
  func.func @transform_4(%arg0: i32) -> (i32, i32, i32, i32) {
    %c0_i32 = arith.constant 0 : i32
    %c0_i32_0 = arith.constant 0 : i32
    %c0_i32_1 = arith.constant 0 : i32
    %c0_i32_2 = arith.constant 0 : i32
    return %arg0, %c0_i32, %c0_i32_0, %c0_i32_1 : i32, i32, i32, i32
  }
  func.func @transform_5(%arg0: i32) -> (i32, i32, i32, i32) {
    %c0_i32 = arith.constant 0 : i32
    %c0_i32_0 = arith.constant 0 : i32
    %c0_i32_1 = arith.constant 0 : i32
    %c0_i32_2 = arith.constant 0 : i32
    return %arg0, %c0_i32, %c0_i32_0, %c0_i32_1 : i32, i32, i32, i32
  }
}

</mosaic_0001>

<bundles_post_ra>
// kernel: divided_attention_forward.5
= control target key start
LH: loop header
LB: loop body
LE: loop exit
PB: predicated region body
PF: predicated region fallthrough
CT: control target
= control target key end

     0   :  { %vm24_vm0 = vcmask 261120   ;;  %s114_s1 = inlined_call_operand.vmem [shape: f32[32,32], index: 1, kind: input, shape index: {}]   ;;  %s115_s2 = inlined_call_operand.vmem [shape: f32[1,32], index: 2, kind: input, shape index: {}]   ;;  %s116_s0 = inlined_call_operand.vmem [shape: f32[16,32], index: 0, kind: input, shape index: {}]   ;;  %s117_s3 = inlined_call_operand.vmem [shape: f32[16,32], index: 3, kind: output, shape index: {}]  }
   0x1   :  { %v19_v0 = vld [vmem:[%s114_s1 + $0x18] sm:$0xff]  ;;  %v18_v1 = vld [vmem:[%s114_s1 + $0x10] sm:$0xff]  ;;  %v17_v2 = vld [vmem:[%s114_s1 + $0x8] sm:$0xff] }
   0x2   :  { %43 = vmatpush.msra.mxu0 %v19_v0  ;;  %62 = vmatpush.msra.mxu1 %v19_v0  ;;  %v16_v3 = vld [vmem:[%s114_s1] sm:$0xff]  ;;  %v15_v5 = vld [vmem:[%s116_s0 + $0x8] sm:$0xff] }
   0x3   :  { %v14_v4 = vld [vmem:[%s116_s0] sm:$0xff] }
   0x4   :  { %44 = vmatpush.msra.mxu0 %v18_v1  ;;  %63 = vmatpush.msra.mxu1 %v18_v1  ;;  %v66_v6 = vld [vmem:[%s115_s2] ss:$0 sm:$0xff] }
   0x6   :  { %45 = vmatpush.msra.mxu0 %v17_v2  ;;  %64 = vmatpush.msra.mxu1 %v17_v2 }
   0x8   :  { %46 = vmatpush.msra.mxu0 %v16_v3  ;;  %65 = vmatpush.msra.mxu1 %v16_v3 }
   0x9   :  { %60 = vmatmul.msk.f32.vlgmr.msra.gmra.mxu0 %vm24_vm0, %v14_v4  ;;  %61 = vmatmul.msk.f32.vlgmr.msra.gmra.mxu1 %vm24_vm0, %v15_v5 }
  0x86   :  { %v48_v7 = vpop.f32.mrf.mxu0  ;;  %v51_v8 = vpop.f32.mrf.mxu1 }
  0x87   :  { %v49_v9 = vadd.f32 %v66_v6, %v48_v7  ;;  %v52_v10 = vadd.f32 %v66_v6, %v51_v8 }
  0x89   :  { %54 = vst.msk [vmem:[%s117_s3] sm:$0xff] %vm24_vm0, %v49_v9 }
  0x8a   :  { %55 = vst.msk [vmem:[%s117_s3 + $0x8] sm:$0xff] %vm24_vm0, %v52_v10 }

// kernel: divided_attention_forward.9
= control target key start
LH: loop header
LB: loop body
LE: loop exit
PB: predicated region body
PF: predicated region fallthrough
CT: control target
= control target key end

     0   :  { %s162_s0 = inlined_call_operand.vmem [shape: f32[16,32], index: 0, kind: input, shape index: {}]   ;;  %s163_s1 = inlined_call_operand.vmem [shape: f32[32,32], index: 1, kind: input, shape index: {}]   ;;  %s164_s2 = inlined_call_operand.vmem [shape: f32[1,32], index: 2, kind: input, shape index: {}]   ;;  %s165_s3 = inlined_call_operand.hbm [shape: f32[16,32], index: 3, kind: output, shape index: {}]  }
   0x1   :  { %v20_v0 = vld [vmem:[%s163_s1 + $0x18] sm:$0xff]  ;;  %v19_v1 = vld [vmem:[%s163_s1 + $0x10] sm:$0xff]  ;;  %v18_v2 = vld [vmem:[%s163_s1 + $0x8] sm:$0xff] }
   0x2   :  { %44 = vmatpush.msra.mxu0 %v20_v0  ;;  %77 = vmatpush.msra.mxu1 %v20_v0 }
   0x3   :  { %8 = vsyncpa [#allocation3], 0  ;;  %v17_v3 = vld [vmem:[%s163_s1] sm:$0xff]  ;;  %vm25_vm0 = vcmask 261120   ;;  %v16_v5 = vld [vmem:[%s162_s0 + $0x8] sm:$0xff]  ;;  %s111_s1 = smov [#allocation2]  }
   0x4   :  { %45 = vmatpush.msra.mxu0 %v19_v1  ;;  %78 = vmatpush.msra.mxu1 %v19_v1  ;;  %v15_v4 = vld [vmem:[%s162_s0] sm:$0xff]  ;;  %s61_s26 = sshll.u32 %s111_s1, 4  ;;  %s63_s29 = sshll.u32 %s165_s3, 4  ;;  %s62_s26 = int_to_ptr.vmem [resolvable:$true] %s61_s26  ;;  %s64_s29 = int_to_ptr.hbm [resolvable:$true] %s63_s29 }
   0x5   :  { %v84_v6 = vld [vmem:[%s164_s2] ss:$0 sm:$0xff]  ;;  %s112_s0 = smov 128   ;;  %s113_s30 = smov 8  }
   0x6   :  { %46 = vmatpush.msra.mxu0 %v18_v2  ;;  %79 = vmatpush.msra.mxu1 %v18_v2 }
   0x8   :  { %47 = vmatpush.msra.mxu0 %v17_v3  ;;  %80 = vmatpush.msra.mxu1 %v17_v3 }
   0x9   :  { %75 = vmatmul.msk.f32.vlgmr.msra.gmra.mxu0 %vm25_vm0, %v15_v4  ;;  %76 = vmatmul.msk.f32.vlgmr.msra.gmra.mxu1 %vm25_vm0, %v16_v5 }
  0x86   :  { %v49_v7 = vpop.f32.mrf.mxu0  ;;  %v52_v8 = vpop.f32.mrf.mxu1 }
  0x87   :  { %v50_v9 = vadd.f32 %v84_v6, %v49_v7  ;;  %v53_v10 = vadd.f32 %v84_v6, %v52_v8 }
  0x89   :  { %55 = vst.msk [vmem:[#allocation2] sm:$0xff] %vm25_vm0, %v50_v9 }
  0x8a   :  { %56 = vst.msk [vmem:[#allocation2 + $0x8] sm:$0xff] %vm25_vm0, %v53_v10 }
  0x8b   :  { %69 = dma.vmem_to_hbm [thread:$0]  %s62_s26, 256, %s64_s29, [#allocation3], %s112_s0, %s112_s0, %s113_s30  }
  0x8c   :  { %109 = dma.done.wait [#allocation3], 256  }
  0x8d   :  { %110 = vsyncadd [#allocation3], 4294967040 }
  0x8e   :  { %74 = vsyncpa [#allocation3], 1 }

// kernel: divided_attention_forward.8
= control target key start
LH: loop header
LB: loop body
LE: loop exit
PB: predicated region body
PF: predicated region fallthrough
CT: control target
= control target key end

     0   :  { %s1519_s18 = smov 0   ;;  %s1972_s0 = inlined_call_operand.vmem [shape: f32[2,8,4,8], index: 0, kind: input, shape index: {}]   ;;  %s1973_s1 = inlined_call_operand.vmem [shape: f32[2,8,4,8], index: 1, kind: input, shape index: {}]   ;;  %s1974_s2 = inlined_call_operand.vmem [shape: f32[2,8,4,8], index: 2, kind: input, shape index: {}]   ;;  %s1975_s3 = inlined_call_operand.vmem [shape: f32[8,15], index: 3, kind: input, shape index: {}]   ;;  %s1976_s4 = inlined_call_operand.vmem [shape: s8[2,4,8,8], index: 4, kind: input, shape index: {}]   ;;  %s1977_s5 = inlined_call_operand.vmem [shape: f32[2,8,4,8], index: 5, kind: output, shape index: {}]  }
   0x1 LB: > { %s1400_s19 = sadd.s32 4294967295, %s1479_s18   ;;  %p1404_p0 = scmp.ge.s32.totalorder %s1479_s18, 1  ;;  %s1479_s18 = sphi %s1519_s18, %s15_s18  }
   0x2   : > { %p217_p1 = scmp.lt.s32.totalorder %s1479_s18, 3 }
   0x4   : > { %p218_p2 = pnand %p1404_p0, %p217_p1 }
   0x5   : > { %p260_p3 = scmp.lt.s32.totalorder (!%p218_p2), %s1400_s19, 1  ;;  %s1481_s26 = smov (!%p218_p2), 5  }
   0x6   : > { %221 = sbr.rel (%p218_p2) target bundleno = 1469 (0x5bd), region = 40  ;;  %s1482_s27 = smov (!%p218_p2), 3  }
   0x7   : > { %s1483_s28 = smov (!%p218_p2), 1   ;;  %s1484_s29 = smov (!%p218_p2), 6  }
   0x8   : > { %s1485_s30 = smov (!%p218_p2), 4   ;;  %s1486_s6 = smov (!%p218_p2), 2  }
   0x9   : > { %s1487_s7 = smov (!%p218_p2), 7   ;;  %s1488_s11 = smov (!%p218_p2), 121  }
   0xb   : > { %v1530_v0 = vld [vmem:[%s1975_s3] sm:$0xff]  ;;  %s1988_s19 = smov (!%p260_p3, %s1400_s19), 1  ;;  %vm327_vm0 = vcmask 1041409   ;;  %vm330_vm1 = vcmask 1042434   ;;  %vm333_vm2 = vcmask 1043459   ;;  %vm336_vm3 = vcmask 1044484  }
   0xc   : > { %365 = vmatpush.msra.mxu0 %v1530_v0  ;;  %624 = vmatpush.msra.mxu3 %v1530_v0  ;;  %s1538_s22 = sshll.u32 %s1988_s19, 5  ;;  %vm339_vm4 = vcmask 1045509   ;;  %vm342_vm5 = vcmask 1046534   ;;  %vm345_vm6 = vcmask 1047559   ;;  %vm347_vm7 = vcmask 64512   ;;  %s1439_s12 = sshll.u32 %s1988_s19, 3 }
   0xd   : > { %s1544_s25 = scalar_lea.vmem %s1972_s0, %s1538_s22  ;;  %s1617_s10 = scalar_lea.vmem %s1973_s1, %s1538_s22  ;;  %vm392_vm8 = vcmask 1040384   ;;  %vm394_vm9 = vcmask 1041408   ;;  %vm396_vm10 = vcmask 1042432   ;;  %vm398_vm11 = vcmask 1043456  }
   0xe   : > { %876 = vmatpush.msrb.mxu3 %v1530_v0  ;;  %v286_v1 = vld [vmem:[%s1544_s25] sm:$0x1]  ;;  %v287_v2 = vld [vmem:[%s1544_s25 + $0x4] sm:$0x1]  ;;  %v288_v3 = vld [vmem:[%s1544_s25 + $0x8] sm:$0x1]  ;;  %s1676_s15 = scalar_lea.vmem %s1976_s4, %s1439_s12  ;;  %s1712_s19 = scalar_lea.vmem %s1974_s2, %s1538_s22 }
   0xf   : > { %v289_v4 = vld [vmem:[%s1544_s25 + $0xc] sm:$0x1]  ;;  %v290_v5 = vld [vmem:[%s1544_s25 + $0x10] sm:$0x1]  ;;  %v291_v6 = vld [vmem:[%s1544_s25 + $0x14] sm:$0x1]  ;;  %s1786_s23 = scalar_lea.vmem %s1977_s5, %s1538_s22 }
  0x10   : > { %v292_v7 = vld [vmem:[%s1544_s25 + $0x18] sm:$0x1]  ;;  %v293_v8 = vld [vmem:[%s1544_s25 + $0x1c] sm:$0x1]  ;;  %v294_v9 = vmul.f32 0.35355338, %v286_v1 }
  0x11   : > { %v295_v10 = vmul.f32 0.35355338, %v287_v2  ;;  %v296_v11 = vmul.f32 0.35355338, %v288_v3  ;;  %v297_v12 = vmul.f32 0.35355338, %v289_v4 }
  0x12   : > { %v298_v13 = vmul.f32 0.35355338, %v290_v5  ;;  %v299_v14 = vmul.f32 0.35355338, %v291_v6  ;;  %v300_v15 = vmul.f32 0.35355338, %v292_v7 }
  0x13   : > { %v301_v16 = vmul.f32 0.35355338, %v293_v8  ;;  %v326_v17 = vrot.slane %v295_v10, 7  ;;  %v329_v18 = vrot.slane %v296_v11, 6  ;;  %v332_v19 = vrot.slane %v297_v12, 5 }
  0x14   : > { %v335_v20 = vrot.slane %v298_v13, 4  ;;  %v338_v21 = vrot.slane %v299_v14, 3  ;;  %v553_v22 = vld [vmem:[%s1544_s25 + $0x1] sm:$0x1]  ;;  %v341_v24 = vrot.slane %v300_v15, 2  ;;  %vm1980_vm12 = vcmask 1044480  }
  0x15   : > { %v328_v23 = vsel %vm327_vm0, %v326_v17, %v294_v9  ;;  %v344_v25 = vrot.slane %v301_v16, 1  ;;  %v554_v26 = vld [vmem:[%s1544_s25 + $0x5] sm:$0x1]  ;;  %v555_v27 = vld [vmem:[%s1544_s25 + $0x9] sm:$0x1]  ;;  %vm1979_vm13 = vcmask 1045504  }
  0x16   : > { %v331_v28 = vsel %vm330_vm1, %v329_v18, %v328_v23  ;;  %v556_v29 = vld [vmem:[%s1544_s25 + $0xd] sm:$0x1]  ;;  %v557_v30 = vld [vmem:[%s1544_s25 + $0x11] sm:$0x1]  ;;  %v558_v31 = vld [vmem:[%s1544_s25 + $0x15] sm:$0x1] }
  0x17   : > { %v334_v32 = vsel %vm333_vm2, %v332_v19, %v331_v28  ;;  %v559_v33 = vld [vmem:[%s1544_s25 + $0x19] sm:$0x1]  ;;  %v560_v34 = vld [vmem:[%s1544_s25 + $0x1d] sm:$0x1]  ;;  %v561_v35 = vmul.f32 0.35355338, %v553_v22 }
  0x18   : > { %v337_v36 = vsel %vm336_vm3, %v335_v20, %v334_v32  ;;  %v562_v37 = vmul.f32 0.35355338, %v554_v26  ;;  %v563_v38 = vmul.f32 0.35355338, %v555_v27  ;;  %v564_v39 = vmul.f32 0.35355338, %v556_v29 }
  0x19   : > { %v340_v40 = vsel %vm339_vm4, %v338_v21, %v337_v36  ;;  %v565_v41 = vmul.f32 0.35355338, %v557_v30  ;;  %v566_v42 = vmul.f32 0.35355338, %v558_v31  ;;  %v567_v43 = vmul.f32 0.35355338, %v559_v33 }
  0x1a   : > { %v343_v44 = vsel %vm342_vm5, %v341_v24, %v340_v40  ;;  %v568_v45 = vmul.f32 0.35355338, %v560_v34  ;;  %v593_v46 = vrot.slane %v562_v37, 7  ;;  %v595_v47 = vrot.slane %v563_v38, 6  ;;  %v303_v63 = vld [vmem:[%s1617_s10 + $0x4] sm:$0x1] }
  0x1b   : > { %v346_v48 = vsel %vm345_vm6, %v344_v25, %v343_v44  ;;  %v597_v49 = vrot.slane %v564_v39, 5  ;;  %v599_v50 = vrot.slane %v565_v41, 4  ;;  %v601_v52 = vrot.slane %v566_v42, 3  ;;  %v304_v1 = vld [vmem:[%s1617_s10 + $0x8] sm:$0x1] }
  0x1c   : > { %1415 = vmatmul.msk.f32.vlgmr.msra.gmra.mxu0 %vm347_vm7, %v346_v48  ;;  %v594_v51 = vsel %vm327_vm0, %v593_v46, %v561_v35  ;;  %v603_v54 = vrot.slane %v567_v43, 2  ;;  %v605_v56 = vrot.slane %v568_v45, 1  ;;  %v414_v2 = vrot.slane %v303_v63, 7  ;;  %v302_v3 = vld [vmem:[%s1617_s10] sm:$0x1] }
  0x1d   : > { %v596_v53 = vsel %vm330_vm1, %v595_v47, %v594_v51  ;;  %v305_v4 = vld [vmem:[%s1617_s10 + $0xc] sm:$0x1]  ;;  %v416_v5 = vrot.slane %v304_v1, 6  ;;  %v306_v6 = vld [vmem:[%s1617_s10 + $0x10] sm:$0x1]  ;;  %vm1978_vm14 = vcmask 1046528  }
  0x1e   : > { %v598_v55 = vsel %vm333_vm2, %v597_v49, %v596_v53  ;;  %v415_v7 = vsel %vm327_vm0, %v414_v2, %v302_v3  ;;  %v418_v8 = vrot.slane %v305_v4, 5  ;;  %v307_v9 = vld [vmem:[%s1617_s10 + $0x14] sm:$0x1]  ;;  %v420_v11 = vrot.slane %v306_v6, 4  ;;  %v308_v12 = vld [vmem:[%s1617_s10 + $0x18] sm:$0x1] }
  0x1f   : > { %v600_v57 = vsel %vm336_vm3, %v599_v50, %v598_v55  ;;  %v417_v10 = vsel %vm330_vm1, %v416_v5, %v415_v7  ;;  %v309_v13 = vld [vmem:[%s1617_s10 + $0x1c] sm:$0x1]  ;;  %v422_v15 = vrot.slane %v307_v9, 3  ;;  %v424_v17 = vrot.slane %v308_v12, 2  ;;  %v569_v22 = vld [vmem:[%s1617_s10 + $0x1] sm:$0x1] }
  0x20   : > { %v602_v58 = vsel %vm339_vm4, %v601_v52, %v600_v57  ;;  %v419_v14 = vsel %vm333_vm2, %v418_v8, %v417_v10  ;;  %v426_v18 = vrot.slane %v309_v13, 1  ;;  %v570_v23 = vld [vmem:[%s1617_s10 + $0x5] sm:$0x1]  ;;  %v571_v24 = vld [vmem:[%s1617_s10 + $0x9] sm:$0x1] }
  0x21   : > { %v604_v59 = vsel %vm342_vm5, %v603_v54, %v602_v58  ;;  %v421_v16 = vsel %vm336_vm3, %v420_v11, %v419_v14  ;;  %v572_v25 = vld [vmem:[%s1617_s10 + $0xd] sm:$0x1]  ;;  %v573_v26 = vld [vmem:[%s1617_s10 + $0x11] sm:$0x1]  ;;  %v574_v27 = vld [vmem:[%s1617_s10 + $0x15] sm:$0x1] }
  0x22   : > { %v1577_v60 = vsel %vm345_vm6, %v605_v56, %v604_v59  ;;  %v423_v19 = vsel %vm339_vm4, %v422_v15, %v421_v16  ;;  %v575_v28 = vld [vmem:[%s1617_s10 + $0x19] sm:$0x1]  ;;  %v666_v29 = vrot.slane %v570_v23, 7  ;;  %v668_v30 = vrot.slane %v571_v24, 6  ;;  %v576_v31 = vld [vmem:[%s1617_s10 + $0x1d] sm:$0x1] }
  0x23   : > { %1419 = vmatmul.msk.f32.vlgmr.msra.gmra.mxu3 %vm347_vm7, %v1577_v60  ;;  %v425_v20 = vsel %vm342_vm5, %v424_v17, %v423_v19  ;;  %v670_v32 = vrot.slane %v572_v25, 5  ;;  %v672_v33 = vrot.slane %v573_v26, 4  ;;  %v674_v35 = vrot.slane %v574_v27, 3  ;;  %v806_v27 = vld [vmem:[%s1544_s25 + $0x6] sm:$0x1] }
  0x24   : > { %v427_v21 = vsel %vm345_vm6, %v426_v18, %v425_v20  ;;  %v667_v34 = vsel %vm327_vm0, %v666_v29, %v569_v22  ;;  %v676_v37 = vrot.slane %v575_v28, 2  ;;  %v678_v39 = vrot.slane %v576_v31, 1  ;;  %v807_v28 = vld [vmem:[%s1544_s25 + $0xa] sm:$0x1]  ;;  %v808_v31 = vld [vmem:[%s1544_s25 + $0xe] sm:$0x1] }
  0x25   : > { %1416 = vmatpush.xpose.msk.msra.mxu1 %vm347_vm7, %v427_v21  ;;  %v669_v36 = vsel %vm330_vm1, %v668_v30, %v667_v34  ;;  %v814_v29 = vmul.f32 0.35355338, %v806_v27  ;;  %v805_v30 = vld [vmem:[%s1544_s25 + $0x2] sm:$0x1] }
  0x26   : > { %v671_v38 = vsel %vm333_vm2, %v670_v32, %v669_v36  ;;  %v815_v32 = vmul.f32 0.35355338, %v807_v28  ;;  %v813_v34 = vmul.f32 0.35355338, %v805_v30  ;;  %v810_v36 = vld [vmem:[%s1544_s25 + $0x16] sm:$0x1] }
  0x27   : > { %v673_v40 = vsel %vm336_vm3, %v672_v33, %v671_v38  ;;  %v809_v33 = vld [vmem:[%s1544_s25 + $0x12] sm:$0x1]  ;;  %v845_v38 = vrot.slane %v814_v29, 7 }
  0x28   : > { %1417 = vmatmul.msk.f32.vlgmr.msra.gmra.mxu1 %vm347_vm7, %v346_v48  ;;  %v675_v41 = vsel %vm339_vm4, %v674_v35, %v673_v40  ;;  %v816_v35 = vmul.f32 0.35355338, %v808_v31  ;;  %v811_v40 = vld [vmem:[%s1544_s25 + $0x1a] sm:$0x1] }
  0x29   : > { %v677_v42 = vsel %vm342_vm5, %v676_v37, %v675_v41  ;;  %v817_v37 = vmul.f32 0.35355338, %v809_v33  ;;  %v818_v41 = vmul.f32 0.35355338, %v810_v36  ;;  %v579_v36 = vld [vmem:[%s1712_s19 + $0x9] sm:$0x1] }
  0x2a   : > { %v679_v43 = vsel %vm345_vm6, %v678_v39, %v677_v42  ;;  %v847_v39 = vrot.slane %v815_v32, 6  ;;  %v849_v42 = vrot.slane %v816_v35, 5  ;;  %v578_v35 = vld [vmem:[%s1712_s19 + $0x5] sm:$0x1] }
  0x2b   : > { %1420 = vmatpush.xpose.msk.msrb.mxu0 %vm347_vm7, %v679_v43 }
  0x2e   : > { %1421 = vmatmul.msk.f32.vlgmr.msrb.gmra.mxu0 %vm347_vm7, %v1577_v60 }
  0x99   : > { %v1581_v61 = vpop.f32.mrf.mxu0 }
  0x9a   : > { %383 = vrot.lane.b32.xlu2 %v1581_v61, %s1481_s26  ;;  %377 = vrot.lane.b32.xlu1 %v1581_v61, %s1482_s27 }
  0x9b   : > { %371 = vrot.lane.b32.xlu0 %v1581_v61, %s1483_s28 }
  0xa2   : > { %386 = vrot.lane.b32.xlu2 %v1581_v61, %s1484_s29  ;;  %380 = vrot.lane.b32.xlu1 %v1581_v61, %s1485_s30 }
  0xa3   : > { %374 = vrot.lane.b32.xlu0 %v1581_v61, %s1486_s6 }
  0xa5   : > { %v451_v12 = vpop.f32.mrf.mxu1 }
  0xa6   : > { %v1595_v62 = vpop.f32.mrf.mxu3 }
  0xaa   : > { %633 = vrot.lane.b32.xlu2 %v1595_v62, %s1486_s6  ;;  %630 = vrot.lane.b32.xlu1 %v1595_v62, %s1483_s28 }
  0xab   : > { %389 = vrot.lane.b32.xlu0 %v1581_v61, %s1487_s7  ;;  %v703_v19 = vpop.f32.mrf.mxu0 }
  0xb2   : > { %642 = vrot.lane.b32.xlu2 %v1595_v62, %s1481_s26  ;;  %639 = vrot.lane.b32.xlu1 %v1595_v62, %s1485_s30 }
  0xb3   : > { %636 = vrot.lane.b32.xlu0 %v1595_v62, %s1482_s27 }
  0xba   : > { %648 = vrot.lane.b32.xlu1 %v1595_v62, %s1487_s7 }
  0xbb   : > { %645 = vrot.lane.b32.xlu0 %v1595_v62, %s1484_s29 }
  0xf4   : > { %v384_v46 = vpop.permute.xlu2 %383 }
  0xfc   : > { %v387_v52 = vpop.permute.xlu2 %386 }
 0x104   : > { %v634_v59 = vpop.permute.xlu2 %633 }
 0x10c   : > { %v378_v44 = vpop.permute.xlu1 %377  ;;  %v643_v4 = vpop.permute.xlu2 %642 }
 0x10d   : > { %v372_v45 = vpop.permute.xlu0 %371 }
 0x10e   : > { %v393_v48 = vsel %vm392_vm8, %v1581_v61, %v372_v45  ;;  %v819_v45 = vmul.f32 0.35355338, %v811_v40  ;;  %v746_v40 = vrot.slane %v579_v36, 6 }
 0x114   : > { %v381_v47 = vpop.permute.xlu1 %380 }
 0x115   : > { %v375_v49 = vpop.permute.xlu0 %374 }
 0x116   : > { %v395_v50 = vsel %vm394_vm9, %v393_v48, %v375_v49 }
 0x117   : > { %v397_v51 = vsel %vm396_vm10, %v395_v50, %v378_v44  ;;  %v812_v44 = vld [vmem:[%s1544_s25 + $0x1e] sm:$0x1] }
 0x118   : > { %v399_v53 = vsel %vm398_vm11, %v397_v51, %v381_v47  ;;  %v851_v47 = vrot.slane %v817_v37, 4  ;;  %v820_v49 = vmul.f32 0.35355338, %v812_v44  ;;  %v853_v51 = vrot.slane %v818_v41, 3 }
 0x119   : > { %v401_v54 = vsel %vm1980_vm12, %v399_v53, %v384_v46  ;;  %v846_v46 = vsel %vm327_vm0, %v845_v38, %v813_v34  ;;  %v855_v53 = vrot.slane %v819_v45, 2  ;;  %v744_v37 = vrot.slane %v578_v35, 7  ;;  %v577_v38 = vld [vmem:[%s1712_s19 + $0x1] sm:$0x1] }
 0x11a   : > { %v403_v57 = vsel %vm1979_vm13, %v401_v54, %v387_v52  ;;  %v848_v50 = vsel %vm330_vm1, %v847_v39, %v846_v46  ;;  %v580_v39 = vld [vmem:[%s1712_s19 + $0xd] sm:$0x1]  ;;  %v582_v46 = vld [vmem:[%s1712_s19 + $0x15] sm:$0x1] }
 0x11b   : > { %v850_v52 = vsel %vm333_vm2, %v849_v42, %v848_v50  ;;  %v581_v42 = vld [vmem:[%s1712_s19 + $0x11] sm:$0x1]  ;;  %v745_v44 = vsel %vm327_vm0, %v744_v37, %v577_v38  ;;  %v748_v45 = vrot.slane %v580_v39, 5 }
 0x11c   : > { %v631_v55 = vpop.permute.xlu1 %630  ;;  %v852_v54 = vsel %vm336_vm3, %v851_v47, %v850_v52  ;;  %v747_v47 = vsel %vm330_vm1, %v746_v40, %v745_v44 }
 0x11d   : > { %v390_v56 = vpop.permute.xlu0 %389  ;;  %v651_v60 = vsel %vm392_vm8, %v1595_v62, %v631_v55  ;;  %v454_v62 = vld [vmem:[%s1676_s15] sm:$0xf]   ;;  %v857_v55 = vrot.slane %v820_v49, 1  ;;  %v584_v49 = vld [vmem:[%s1712_s19 + $0x1d] sm:$0x1]  ;;  %v749_v50 = vsel %vm333_vm2, %v748_v45, %v747_v47 }
 0x11e   : > { %v405_v58 = vsel %vm1978_vm14, %v403_v57, %v390_v56  ;;  %v652_v1 = vsel %vm394_vm9, %v651_v60, %v634_v59  ;;  %v455_v10 = vunpack.c.0.s8 %v454_v62  ;;  %v708_v17 = vunpack.c.1.s8 %v454_v62  ;;  %v316_v62 = vld [vmem:[%s1712_s19 + $0x18] sm:$0x1] }
 0x11f   : > { %429 = vrot.lane.b32.xlu2 %v405_v58, %s1488_s11  ;;  %v854_v56 = vsel %vm339_vm4, %v853_v51, %v852_v54  ;;  %v752_v51 = vrot.slane %v582_v46, 3  ;;  %v756_v54 = vrot.slane %v584_v49, 1 }
 0x120   : > { %v456_v11 = vcvt.s32.f32 %v455_v10  ;;  %v709_v18 = vcvt.s32.f32 %v708_v17  ;;  %v856_v57 = vsel %vm342_vm5, %v855_v53, %v854_v56 }
 0x121   : > { %v1700_v58 = vsel %vm345_vm6, %v857_v55, %v856_v57 }
 0x122   : > { %vm457_vm15 = vcmp.gt.f32.partialorder %v456_v11, 0.5  ;;  %1424 = vmatmul.msk.f32.vlgmr.msrb.gmra.mxu3 %vm347_vm7, %v1700_v58  ;;  %v317_v11 = vld [vmem:[%s1712_s19 + $0x1c] sm:$0x1] }
 0x124   : > { %v640_v61 = vpop.permute.xlu1 %639 }
 0x125   : > { %v637_v63 = vpop.permute.xlu0 %636 }
 0x126   : > { %v653_v2 = vsel %vm396_vm10, %v652_v1, %v637_v63 }
 0x127   : > { %v654_v3 = vsel %vm398_vm11, %v653_v2, %v640_v61  ;;  %v311_v2 = vld [vmem:[%s1712_s19 + $0x4] sm:$0x1] }
 0x128   : > { %v655_v6 = vsel %vm1980_vm12, %v654_v3, %v643_v4  ;;  %v312_v3 = vld [vmem:[%s1712_s19 + $0x8] sm:$0x1]  ;;  %v491_v4 = vrot.slane %v311_v2, 7  ;;  %v1057_v2 = vld [vmem:[%s1544_s25 + $0x3] sm:$0x1] }
 0x12c   : > { %v649_v5 = vpop.permute.xlu1 %648 }
 0x12d   : > { %v646_v7 = vpop.permute.xlu0 %645 }
 0x12e   : > { %v656_v8 = vsel %vm1979_vm13, %v655_v6, %v646_v7  ;;  %v313_v6 = vld [vmem:[%s1712_s19 + $0xc] sm:$0x1]  ;;  %v493_v7 = vrot.slane %v312_v3, 6  ;;  %v1060_v3 = vld [vmem:[%s1544_s25 + $0xf] sm:$0x1] }
 0x12f   : > { %v657_v9 = vsel %vm1978_vm14, %v656_v8, %v649_v5  ;;  %vm710_vm14 = vcmp.gt.f32.partialorder %v709_v18, 0.5  ;;  %v310_v5 = vld [vmem:[%s1712_s19] sm:$0x1]  ;;  %v314_v8 = vld [vmem:[%s1712_s19 + $0x10] sm:$0x1]  ;;  %v503_v18 = vrot.slane %v317_v11, 1 }
 0x130   : > { %681 = vrot.lane.b32.xlu0 %v657_v9, %s1488_s11  ;;  %v315_v9 = vld [vmem:[%s1712_s19 + $0x14] sm:$0x1]  ;;  %v492_v10 = vsel %vm327_vm0, %v491_v4, %v310_v5  ;;  %v1062_v11 = vld [vmem:[%s1544_s25 + $0x17] sm:$0x1] }
 0x179   : > { %v430_v13 = vpop.permute.xlu2 %429 }
 0x17a   : > { %v452_v14 = vadd.f32 %v451_v12, %v430_v13  ;;  %v494_v12 = vsel %vm330_vm1, %v493_v7, %v492_v10  ;;  %v495_v13 = vrot.slane %v313_v6, 5  ;;  %v1061_v6 = vld [vmem:[%s1544_s25 + $0x13] sm:$0x1]  ;;  %v1068_v7 = vmul.f32 0.35355338, %v1060_v3 }
 0x17c   : > { %v458_v15 = vsel %vm457_vm15, -1e+30, %v452_v14  ;;  %v497_v14 = vrot.slane %v314_v8, 4  ;;  %v496_v17 = vsel %vm333_vm2, %v495_v13, %v494_v12  ;;  %v1069_v12 = vmul.f32 0.35355338, %v1061_v6 }
 0x17d   : > { %v459_v16 = vsel %vm347_vm7, %v458_v15, -inf  ;;  %v1101_v13 = vrot.slane %v1068_v7, 5 }
 0x17e   : > { %460 = vmax.xlane.f32.xlu1 %v459_v16  ;;  %v501_v16 = vrot.slane %v316_v62, 2 }
 0x1a2   : > { %v682_v20 = vpop.permute.xlu0 %681 }
 0x1a3   : > { %v704_v21 = vadd.f32 %v703_v19, %v682_v20  ;;  %v498_v19 = vsel %vm336_vm3, %v497_v14, %v496_v17  ;;  %v1063_v17 = vld [vmem:[%s1544_s25 + $0x1b] sm:$0x1] }
 0x1a5   : > { %v711_v22 = vsel %vm710_vm14, -1e+30, %v704_v21  ;;  %v1735_v41 = vpop.f32.mrf.mxu3 }
 0x1a6   : > { %v712_v23 = vsel %vm347_vm7, %v711_v22, -inf  ;;  %882 = vrot.lane.b32.xlu1 %v1735_v41, %s1483_s28 }
 0x1a7   : > { %713 = vmax.xlane.f32.xlu2 %v712_v23 }
 0x1ae   : > { %891 = vrot.lane.b32.xlu1 %v1735_v41, %s1485_s30 }
 0x1f1   : > { %v461_v24 = vpop.xlane.xlu1 %460 }
 0x1f2   : > { %v462_v25 = vsub.f32 %v458_v15, %v461_v24  ;;  %v499_v15 = vrot.slane %v315_v9, 3 }
 0x1f4   : > { %v463_v26 = vmul.f32 1.442695, %v462_v25  ;;  %v500_v20 = vsel %vm339_vm4, %v499_v15, %v498_v19 }
 0x1f5   : > { %v502_v21 = vsel %vm342_vm5, %v501_v16, %v500_v20 }
 0x1f6   : > { %1457 = vpow2.f32 %v463_v26 }
 0x1fc   : > { %v1688_v43 = vpop.eup %1457 }
 0x1fd   : > { %v465_v48 = vsel %vm347_vm7, %v1688_v43, 0.0 }
 0x1fe   : > { %466 = vadd.xlane.f32.xlu0 %v465_v48  ;;  %v583_v48 = vld [vmem:[%s1712_s19 + $0x19] sm:$0x1] }
 0x1ff   : > { %v754_v53 = vrot.slane %v583_v48, 2 }
 0x212   : > { %885 = vrot.lane.b32.xlu0 %v1735_v41, %s1486_s6 }
 0x21a   : > { %v714_v59 = vpop.xlane.xlu2 %713  ;;  %888 = vrot.lane.b32.xlu0 %v1735_v41, %s1482_s27 }
 0x21b   : > { %v715_v60 = vsub.f32 %v711_v22, %v714_v59  ;;  %v504_v22 = vsel %vm345_vm6, %v503_v18, %v502_v21  ;;  %v1058_v59 = vld [vmem:[%s1544_s25 + $0x7] sm:$0x1]  ;;  %v1070_v18 = vmul.f32 0.35355338, %v1062_v11  ;;  %v1103_v21 = vrot.slane %v1069_v12, 4 }
 0x21c   : > { %524 = vmatpush.msra.mxu2 %v504_v22 }
 0x21d   : > { %v716_v61 = vmul.f32 1.442695, %v715_v60  ;;  %v1059_v60 = vld [vmem:[%s1544_s25 + $0xb] sm:$0x1] }
 0x21e   : > { %v1067_v4 = vmul.f32 0.35355338, %v1059_v60  ;;  %v824_v60 = vld [vmem:[%s1617_s10 + $0xe] sm:$0x1] }
 0x21f   : > { %1459 = vpow2.f32 %v716_v61  ;;  %v1066_v61 = vmul.f32 0.35355338, %v1058_v59  ;;  %v821_v59 = vld [vmem:[%s1617_s10 + $0x2] sm:$0x1] }
 0x220   : > { %v1099_v8 = vrot.slane %v1067_v4, 6  ;;  %v828_v4 = vld [vmem:[%s1617_s10 + $0x1e] sm:$0x1] }
 0x221   : > { %v1097_v5 = vrot.slane %v1066_v61, 7  ;;  %v825_v61 = vld [vmem:[%s1617_s10 + $0x12] sm:$0x1] }
 0x222   : > { %897 = vrot.lane.b32.xlu0 %v1735_v41, %s1484_s29  ;;  %v924_v6 = vrot.slane %v825_v61, 4 }
 0x225   : > { %v1704_v63 = vpop.eup %1459 }
 0x226   : > { %v718_v1 = vsel %vm347_vm7, %v1704_v63, 0.0 }
 0x227   : > { %719 = vadd.xlane.f32.xlu2 %v718_v1 }
 0x23f   : > { %894 = vrot.lane.b32.xlu2 %v1735_v41, %s1481_s26 }
 0x271   : > { %v467_v23 = vpop.xlane.xlu0 %466 }
 0x272   : > { %1461 = vrcp.f32 %v467_v23  ;;  %v479_v27 = vand.u32 2147483648, %v467_v23  ;;  %v477_v29 = vand.u32 2147483647, %v467_v23  ;;  %vm473_vm15 = vweird.f32 %v467_v23 }
 0x274   : > { %v480_v31 = vor.u32 1.1754944e-38, %v479_v27  ;;  %vm478_vm12 = vcmp.eq.f32.partialorder %v477_v29, 8.507059e+37  ;;  %v1105_v27 = vrot.slane %v1070_v18, 3  ;;  %v1077_v18 = vld [vmem:[%s1617_s10 + $0x13] sm:$0x1] }
 0x278   : > { %v1462_v24 = vpop.eup %1461 }
 0x279   : > { %v469_v25 = vmul.f32 %v1462_v24, %v467_v23  ;;  %vm474_vm14 = vweird.f32 %v1462_v24 }
 0x27a   : > { %vm475_vm13 = vmor %vm473_vm15, %vm474_vm14 }
 0x27b   : > { %v470_v26 = vsub.f32 1.0, %v469_v25  ;;  %v1071_v25 = vmul.f32 0.35355338, %v1063_v17  ;;  %v1076_v17 = vld [vmem:[%s1617_s10 + $0xf] sm:$0x1] }
 0x27d   : > { %v471_v28 = vmul.f32 %v1462_v24, %v470_v26 }
 0x27f   : > { %v472_v30 = vadd.f32 %v1462_v24, %v471_v28 }
 0x281   : > { %v476_v32 = vsel %vm475_vm13, %v1462_v24, %v472_v30  ;;  %v1064_v24 = vld [vmem:[%s1544_s25 + $0x1f] sm:$0x1] }
 0x282   : > { %v481_v33 = vsel %vm478_vm12, %v480_v31, %v476_v32  ;;  %v1072_v31 = vmul.f32 0.35355338, %v1064_v24  ;;  %v1080_v24 = vld [vmem:[%s1617_s10 + $0x1f] sm:$0x1] }
 0x283   : > { %v482_v34 = vmul.f32 %v1688_v43, %v481_v33  ;;  %v750_v43 = vrot.slane %v581_v42, 4  ;;  %v1107_v33 = vrot.slane %v1071_v25, 2  ;;  %v1174_v25 = vrot.slane %v1076_v17, 5 }
 0x284   : > { %v1109_v35 = vrot.slane %v1072_v31, 1 }
 0x285   : > { %1418 = vmatmul.msk.f32.vlgmr.msra.gmra.mxu2 %vm347_vm7, %v482_v34  ;;  %v751_v52 = vsel %vm336_vm3, %v750_v43, %v749_v50 }
 0x286   : > { %v753_v55 = vsel %vm339_vm4, %v752_v51, %v751_v52 }
 0x287   : > { %v755_v56 = vsel %vm342_vm5, %v754_v53, %v753_v55  ;;  %v822_v55 = vld [vmem:[%s1617_s10 + $0x6] sm:$0x1] }
 0x288   : > { %v757_v57 = vsel %vm345_vm6, %v756_v54, %v755_v56  ;;  %v823_v56 = vld [vmem:[%s1617_s10 + $0xa] sm:$0x1] }
 0x289   : > { %777 = vmatpush.msrb.mxu2 %v757_v57  ;;  %v918_v57 = vrot.slane %v822_v55, 7 }
 0x28b   : > { %1128 = vmatpush.msra.mxu2 %v1530_v0  ;;  %v1065_v0 = vmul.f32 0.35355338, %v1057_v2  ;;  %v827_v2 = vld [vmem:[%s1617_s10 + $0x1a] sm:$0x1]  ;;  %v919_v3 = vsel %vm327_vm0, %v918_v57, %v821_v59 }
 0x28d   : > { %v1098_v62 = vsel %vm327_vm0, %v1097_v5, %v1065_v0  ;;  %v920_v0 = vrot.slane %v823_v56, 6  ;;  %v922_v5 = vrot.slane %v824_v60, 5 }
 0x28e   : > { %v1100_v15 = vsel %vm330_vm1, %v1099_v8, %v1098_v62 }
 0x28f   : > { %v1102_v22 = vsel %vm333_vm2, %v1101_v13, %v1100_v15  ;;  %v921_v8 = vsel %vm330_vm1, %v920_v0, %v919_v3  ;;  %v1073_v13 = vld [vmem:[%s1617_s10 + $0x3] sm:$0x1]  ;;  %v1075_v15 = vld [vmem:[%s1617_s10 + $0xb] sm:$0x1]  ;;  %v1427_v3 = vld [vmem:[%s1676_s15 + $0x4] sm:$0xf]  }
 0x290   : > { %v1104_v29 = vsel %vm336_vm3, %v1103_v21, %v1102_v22  ;;  %v923_v62 = vsel %vm333_vm2, %v922_v5, %v921_v8  ;;  %v1079_v21 = vld [vmem:[%s1617_s10 + $0x1b] sm:$0x1] }
 0x291   : > { %v1106_v34 = vsel %vm339_vm4, %v1105_v27, %v1104_v29  ;;  %v925_v11 = vsel %vm336_vm3, %v924_v6, %v923_v62  ;;  %v1212_v62 = vunpack.c.1.s8 %v1427_v3 }
 0x292   : > { %v1108_v36 = vsel %vm342_vm5, %v1107_v33, %v1106_v34 }
 0x293   : > { %v1778_v37 = vsel %vm345_vm6, %v1109_v35, %v1108_v36 }
 0x29a   : > { %v720_v1 = vpop.xlane.xlu2 %719 }
 0x29b   : > { %1463 = vrcp.f32 %v720_v1  ;;  %v732_v16 = vand.u32 2147483648, %v720_v1  ;;  %v730_v20 = vand.u32 2147483647, %v720_v1  ;;  %vm726_vm13 = vweird.f32 %v720_v1 }
 0x29d   : > { %v733_v26 = vor.u32 1.1754944e-38, %v732_v16  ;;  %vm731_vm15 = vcmp.eq.f32.partialorder %v730_v20, 8.507059e+37 }
 0x2a1   : > { %v1464_v9 = vpop.eup %1463 }
 0x2a2   : > { %v722_v10 = vmul.f32 %v1464_v9, %v720_v1  ;;  %vm727_vm12 = vweird.f32 %v1464_v9  ;;  %v826_v1 = vld [vmem:[%s1617_s10 + $0x16] sm:$0x1] }
 0x2a3   : > { %vm728_vm14 = vmor %vm726_vm13, %vm727_vm12  ;;  %vm544_vm12 = vcmask 57344   ;;  %v926_v7 = vrot.slane %v826_v1, 3  ;;  %vm1981_vm13 = vcmask 1044480  }
 0x2a4   : > { %v723_v14 = vsub.f32 1.0, %v722_v10  ;;  %v930_v10 = vrot.slane %v828_v4, 1  ;;  %v960_v4 = vunpack.c.0.s8 %v1427_v3 }
 0x2a5   : > { %v927_v12 = vsel %vm339_vm4, %v926_v7, %v925_v11 }
 0x2a6   : > { %v724_v19 = vmul.f32 %v1464_v9, %v723_v14  ;;  %v1074_v14 = vld [vmem:[%s1617_s10 + $0x7] sm:$0x1]  ;;  %v961_v0 = vcvt.s32.f32 %v960_v4 }
 0x2a7   : > { %v1170_v22 = vrot.slane %v1074_v14, 7 }
 0x2a8   : > { %v725_v23 = vadd.f32 %v1464_v9, %v724_v19  ;;  %v1078_v19 = vld [vmem:[%s1617_s10 + $0x17] sm:$0x1] }
 0x2a9   : > { %v1171_v27 = vsel %vm327_vm0, %v1170_v22, %v1073_v13 }
 0x2aa   : > { %v729_v28 = vsel %vm728_vm14, %v1464_v9, %v725_v23  ;;  %v928_v9 = vrot.slane %v827_v2, 2  ;;  %v1172_v23 = vrot.slane %v1075_v15, 6  ;;  %vm1982_vm14 = vcmask 1045504  }
 0x2ab   : > { %v734_v30 = vsel %vm731_vm15, %v733_v26, %v729_v28  ;;  %v1176_v26 = vrot.slane %v1077_v18, 4  ;;  %v1178_v28 = vrot.slane %v1078_v19, 3  ;;  %vm1985_vm15 = vmmov %vm1982_vm14 }
 0x2ac   : > { %v735_v32 = vmul.f32 %v1704_v63, %v734_v30  ;;  %v929_v16 = vsel %vm342_vm5, %v928_v9, %v927_v12  ;;  %v1173_v29 = vsel %vm330_vm1, %v1172_v23, %v1171_v27  ;;  %v1180_v30 = vrot.slane %v1079_v21, 2  ;;  %v831_v27 = vld [vmem:[%s1712_s19 + $0xa] sm:$0x1] }
 0x2ad   : > { %v931_v20 = vsel %vm345_vm6, %v930_v10, %v929_v16  ;;  %v1175_v31 = vsel %vm333_vm2, %v1174_v25, %v1173_v29  ;;  %v1213_v10 = vcvt.s32.f32 %v1212_v62  ;;  %v829_v29 = vld [vmem:[%s1712_s19 + $0x2] sm:$0x1] }
 0x2ae   : > { %1423 = vmatmul.msk.f32.vlgmr.msrb.gmra.mxu2 %vm347_vm7, %v735_v32  ;;  %1425 = vmatpush.xpose.msk.msrb.mxu1 %vm347_vm7, %v931_v20  ;;  %v1182_v32 = vrot.slane %v1080_v24, 1  ;;  %v1177_v33 = vsel %vm336_vm3, %v1176_v26, %v1175_v31  ;;  %v830_v26 = vld [vmem:[%s1712_s19 + $0x6] sm:$0x1]  ;;  %v998_v31 = vrot.slane %v831_v27, 6 }
 0x2af   : > { %v1179_v34 = vsel %vm339_vm4, %v1178_v28, %v1177_v33  ;;  %v996_v28 = vrot.slane %v830_v26, 7 }
 0x2b0   : > { %v1181_v35 = vsel %vm342_vm5, %v1180_v30, %v1179_v34  ;;  %v832_v30 = vld [vmem:[%s1712_s19 + $0xe] sm:$0x1] }
 0x2b1   : > { %1426 = vmatmul.msk.f32.vlgmr.msrb.gmra.mxu1 %vm347_vm7, %v1700_v58  ;;  %v1183_v36 = vsel %vm345_vm6, %v1182_v32, %v1181_v35  ;;  %v833_v32 = vld [vmem:[%s1712_s19 + $0x12] sm:$0x1]  ;;  %v997_v33 = vsel %vm327_vm0, %v996_v28, %v829_v29  ;;  %v1000_v34 = vrot.slane %v832_v30, 5  ;;  %v834_v35 = vld [vmem:[%s1712_s19 + $0x16] sm:$0x1] }
 0x2b2   : > { %1430 = vmatpush.xpose.msk.msra.mxu3 %vm347_vm7, %v1183_v36  ;;  %v999_v36 = vsel %vm330_vm1, %v998_v31, %v997_v33 }
 0x2b5   : > { %1431 = vmatmul.msk.f32.vlgmr.msra.gmra.mxu3 %vm347_vm7, %v1778_v37 }
 0x2b6   : > { %1429 = vmatmul.msk.f32.vlgmr.msra.gmra.mxu2 %vm347_vm7, %v1778_v37 }
 0x308   : > { %v526_v63 = vpop.f32.mrf.mxu2 }
 0x309   : > { %v530_v38 = vrot.slane %v526_v63, 1  ;;  %v531_v39 = vrot.slane %v526_v63, 2  ;;  %v532_v40 = vrot.slane %v526_v63, 3  ;;  %545 = vst.msk [vmem:[%s1786_s23] sm:$0x1] %vm544_vm12, %v526_v63  ;;  %v533_v42 = vrot.slane %v526_v63, 4 }
 0x30a   : > { %v534_v44 = vrot.slane %v526_v63, 5  ;;  %v535_v45 = vrot.slane %v526_v63, 6  ;;  %v536_v46 = vrot.slane %v526_v63, 7  ;;  %v886_v63 = vpop.permute.xlu0 %885 }
 0x30b   : > { %546 = vst.msk [vmem:[%s1786_s23 + $0x4] sm:$0x1] %vm544_vm12, %v530_v38  ;;  %v895_v38 = vpop.permute.xlu2 %894 }
 0x30c   : > { %547 = vst.msk [vmem:[%s1786_s23 + $0x8] sm:$0x1] %vm544_vm12, %v531_v39  ;;  %v883_v39 = vpop.permute.xlu1 %882 }
 0x30d   : > { %548 = vst.msk [vmem:[%s1786_s23 + $0xc] sm:$0x1] %vm544_vm12, %v532_v40 }
 0x30e   : > { %549 = vst.msk [vmem:[%s1786_s23 + $0x10] sm:$0x1] %vm544_vm12, %v533_v42 }
 0x30f   : > { %550 = vst.msk [vmem:[%s1786_s23 + $0x14] sm:$0x1] %vm544_vm12, %v534_v44 }
 0x310   : > { %551 = vst.msk [vmem:[%s1786_s23 + $0x18] sm:$0x1] %vm544_vm12, %v535_v45 }
 0x311   : > { %552 = vst.msk [vmem:[%s1786_s23 + $0x1c] sm:$0x1] %vm544_vm12, %v536_v46 }
 0x312   : > { %v889_v58 = vpop.permute.xlu0 %888 }
 0x314   : > { %v892_v42 = vpop.permute.xlu1 %891 }
 0x31a   : > { %v898_v44 = vpop.permute.xlu0 %897 }
 0x32e   : > { %v955_v5 = vpop.f32.mrf.mxu1 }
 0x331   : > { %v779_v47 = vpop.f32.mrf.mxu2 }
 0x332   : > { %v783_v43 = vrot.slane %v779_v47, 1  ;;  %v784_v48 = vrot.slane %v779_v47, 2  ;;  %v785_v49 = vrot.slane %v779_v47, 3  ;;  %797 = vst.msk [vmem:[%s1786_s23 + $0x1] sm:$0x1] %vm544_vm12, %v779_v47  ;;  %v786_v50 = vrot.slane %v779_v47, 4 }
 0x333   : > { %v787_v51 = vrot.slane %v779_v47, 5  ;;  %v788_v52 = vrot.slane %v779_v47, 6  ;;  %v789_v53 = vrot.slane %v779_v47, 7 }
 0x334   : > { %798 = vst.msk [vmem:[%s1786_s23 + $0x5] sm:$0x1] %vm544_vm12, %v783_v43  ;;  %v903_v43 = vsel %vm392_vm8, %v1735_v41, %v883_v39  ;;  %v1001_v39 = vsel %vm333_vm2, %v1000_v34, %v999_v36 }
 0x335   : > { %799 = vst.msk [vmem:[%s1786_s23 + $0x9] sm:$0x1] %vm544_vm12, %v784_v48  ;;  %v904_v37 = vsel %vm394_vm9, %v903_v43, %v886_v63  ;;  %v1002_v63 = vrot.slane %v833_v32, 4 }
 0x336   : > { %800 = vst.msk [vmem:[%s1786_s23 + $0xd] sm:$0x1] %vm544_vm12, %v785_v49 }
 0x337   : > { %801 = vst.msk [vmem:[%s1786_s23 + $0x11] sm:$0x1] %vm544_vm12, %v786_v50 }
 0x338   : > { %802 = vst.msk [vmem:[%s1786_s23 + $0x15] sm:$0x1] %vm544_vm12, %v787_v51  ;;  %v905_v51 = vsel %vm396_vm10, %v904_v37, %v889_v58  ;;  %v1207_v11 = vpop.f32.mrf.mxu3  ;;  %v1004_v58 = vrot.slane %v834_v35, 3  ;;  %v1083_v37 = vld [vmem:[%s1712_s19 + $0xb] sm:$0x1] }
 0x339   : > { %803 = vst.msk [vmem:[%s1786_s23 + $0x19] sm:$0x1] %vm544_vm12, %v788_v52  ;;  %v1818_v54 = vpop.f32.mrf.mxu2 }
 0x33a   : > { %804 = vst.msk [vmem:[%s1786_s23 + $0x1d] sm:$0x1] %vm544_vm12, %v789_v53  ;;  %1143 = vrot.lane.b32.xlu0 %v1818_v54, %s1485_s30  ;;  %1137 = vrot.lane.b32.xlu1 %v1818_v54, %s1486_s6 }
 0x33b   : > { %1134 = vrot.lane.b32.xlu2 %v1818_v54, %s1483_s28 }
 0x342   : > { %1152 = vrot.lane.b32.xlu0 %v1818_v54, %s1487_s7  ;;  %1146 = vrot.lane.b32.xlu1 %v1818_v54, %s1481_s26 }
 0x343   : > { %1140 = vrot.lane.b32.xlu2 %v1818_v54, %s1482_s27 }
 0x34a   : > { %900 = vrot.lane.b32.xlu1 %v1735_v41, %s1487_s7  ;;  %v906_v41 = vsel %vm398_vm11, %v905_v51, %v892_v42  ;;  %v1003_v42 = vsel %vm336_vm3, %v1002_v63, %v1001_v39  ;;  %v1081_v51 = vld [vmem:[%s1712_s19 + $0x3] sm:$0x1] }
 0x34b   : > { %1149 = vrot.lane.b32.xlu2 %v1818_v54, %s1484_s29 }
 0x395   : > { %v1135_v40 = vpop.permute.xlu2 %1134 }
 0x396   : > { %v1155_v48 = vsel %vm392_vm8, %v1818_v54, %v1135_v40  ;;  %vm1983_vm8 = vcmask 1046528   ;;  %v836_v40 = vld [vmem:[%s1712_s19 + $0x1e] sm:$0x1] }
 0x39d   : > { %v1141_v45 = vpop.permute.xlu2 %1140 }
 0x3a5   : > { %v1150_v55 = vpop.permute.xlu2 %1149 }
 0x3ac   : > { %v1144_v46 = vpop.permute.xlu0 %1143  ;;  %v1138_v47 = vpop.permute.xlu1 %1137 }
 0x3ad   : > { %v1156_v49 = vsel %vm394_vm9, %v1155_v48, %v1138_v47  ;;  %vm1984_vm9 = vmmov %vm1981_vm13 }
 0x3ae   : > { %v1157_v50 = vsel %vm396_vm10, %v1156_v49, %v1141_v45  ;;  %v907_v60 = vsel %vm1984_vm9, %v906_v41, %v895_v38  ;;  %vm1986_vm10 = vmmov %vm1983_vm8  ;;  %v835_v38 = vld [vmem:[%s1712_s19 + $0x1a] sm:$0x1]  ;;  %v1005_v45 = vsel %vm339_vm4, %v1004_v58, %v1003_v42  ;;  %v1082_v49 = vld [vmem:[%s1712_s19 + $0x7] sm:$0x1] }
 0x3af   : > { %v1158_v53 = vsel %vm398_vm11, %v1157_v50, %v1144_v46  ;;  %v908_v61 = vsel %vm1985_vm15, %v907_v60, %v898_v44  ;;  %vm962_vm11 = vcmp.gt.f32.partialorder %v961_v0, 0.5  ;;  %v1006_v44 = vrot.slane %v835_v38, 2 }
 0x3b0   : > { %v1008_v46 = vrot.slane %v836_v40, 1  ;;  %v1248_v50 = vrot.slane %v1082_v49, 7 }
 0x3b1   : > { %v1007_v47 = vsel %vm342_vm5, %v1006_v44, %v1005_v45 }
 0x3b2   : > { %v1009_v43 = vsel %vm345_vm6, %v1008_v46, %v1007_v47  ;;  %v1249_v41 = vsel %vm327_vm0, %v1248_v50, %v1081_v51 }
 0x3b3   : > { %1029 = vmatpush.msra.mxu0 %v1009_v43 }
 0x3b4   : > { %v1147_v52 = vpop.permute.xlu1 %1146  ;;  %v1153_v57 = vpop.permute.xlu0 %1152 }
 0x3b5   : > { %v1159_v56 = vsel %vm1981_vm13, %v1158_v53, %v1147_v52  ;;  %vm1214_vm13 = vcmp.gt.f32.partialorder %v1213_v10, 0.5  ;;  %v1084_v52 = vld [vmem:[%s1712_s19 + $0xf] sm:$0x1]  ;;  %v1085_v53 = vld [vmem:[%s1712_s19 + $0x13] sm:$0x1] }
 0x3b6   : > { %v1160_v54 = vsel %vm1982_vm14, %v1159_v56, %v1150_v55  ;;  %v1086_v55 = vld [vmem:[%s1712_s19 + $0x17] sm:$0x1]  ;;  %v1087_v56 = vld [vmem:[%s1712_s19 + $0x1b] sm:$0x1]  ;;  %v1254_v60 = vrot.slane %v1085_v53, 4 }
 0x3b7   : > { %v1161_v59 = vsel %vm1983_vm8, %v1160_v54, %v1153_v57  ;;  %v1088_v57 = vld [vmem:[%s1712_s19 + $0x1f] sm:$0x1]  ;;  %v1250_v54 = vrot.slane %v1083_v37, 6  ;;  %v1258_v3 = vrot.slane %v1087_v56, 2 }
 0x3b8   : > { %1185 = vrot.lane.b32.xlu1 %v1161_v59, %s1488_s11  ;;  %v1252_v59 = vrot.slane %v1084_v52, 5 }
 0x3bc   : > { %v901_v1 = vpop.permute.xlu1 %900 }
 0x3bd   : > { %v909_v2 = vsel %vm1986_vm10, %v908_v61, %v901_v1  ;;  %v1256_v61 = vrot.slane %v1086_v55, 3 }
 0x3be   : > { %933 = vrot.lane.b32.xlu2 %v909_v2, %s1488_s11  ;;  %v1251_v2 = vsel %vm330_vm1, %v1250_v54, %v1249_v41 }
 0x3bf   : > { %v1253_v0 = vsel %vm333_vm2, %v1252_v59, %v1251_v2 }
 0x418   : > { %v934_v6 = vpop.permute.xlu2 %933 }
 0x419   : > { %v956_v7 = vadd.f32 %v955_v5, %v934_v6  ;;  %v1260_v5 = vrot.slane %v1088_v57, 1  ;;  %v1255_v6 = vsel %vm336_vm3, %v1254_v60, %v1253_v0 }
 0x41b   : > { %v963_v8 = vsel %vm962_vm11, -1e+30, %v956_v7 }
 0x41c   : > { %v964_v9 = vsel %vm347_vm7, %v963_v8, -inf }
 0x41d   : > { %965 = vmax.xlane.f32.xlu0 %v964_v9 }
 0x42a   : > { %v1186_v12 = vpop.permute.xlu1 %1185 }
 0x42b   : > { %v1208_v13 = vadd.f32 %v1207_v11, %v1186_v12 }
 0x42d   : > { %v1215_v14 = vsel %vm1214_vm13, -1e+30, %v1208_v13 }
 0x42e   : > { %v1216_v15 = vsel %vm347_vm7, %v1215_v14, -inf }
 0x42f   : > { %1217 = vmax.xlane.f32.xlu2 %v1216_v15 }
 0x490   : > { %v966_v16 = vpop.xlane.xlu0 %965 }
 0x491   : > { %v967_v17 = vsub.f32 %v963_v8, %v966_v16  ;;  %v1257_v8 = vsel %vm339_vm4, %v1256_v61, %v1255_v6 }
 0x492   : > { %v1259_v62 = vsel %vm342_vm5, %v1258_v3, %v1257_v8 }
 0x493   : > { %v968_v18 = vmul.f32 1.442695, %v967_v17  ;;  %v1261_v12 = vsel %vm345_vm6, %v1260_v5, %v1259_v62 }
 0x494   : > { %1281 = vmatpush.msra.mxu1 %v1261_v12 }
 0x495   : > { %1465 = vpow2.f32 %v968_v18 }
 0x49b   : > { %v1895_v19 = vpop.eup %1465 }
 0x49c   : > { %v970_v20 = vsel %vm347_vm7, %v1895_v19, 0.0 }
 0x49d   : > { %971 = vadd.xlane.f32.xlu1 %v970_v20 }
 0x4a2   : > { %v1218_v21 = vpop.xlane.xlu2 %1217 }
 0x4a3   : > { %v1219_v22 = vsub.f32 %v1215_v14, %v1218_v21 }
 0x4a5   : > { %v1220_v23 = vmul.f32 1.442695, %v1219_v22 }
 0x4a7   : > { %1467 = vpow2.f32 %v1220_v23 }
 0x4ad   : > { %v1899_v24 = vpop.eup %1467 }
 0x4ae   : > { %v1222_v25 = vsel %vm347_vm7, %v1899_v24, 0.0 }
 0x4af   : > { %1223 = vadd.xlane.f32.xlu0 %v1222_v25 }
 0x510   : > { %v972_v48 = vpop.xlane.xlu1 %971 }
 0x511   : > { %1469 = vrcp.f32 %v972_v48  ;;  %v984_v9 = vand.u32 2147483648, %v972_v48  ;;  %v982_v11 = vand.u32 2147483647, %v972_v48  ;;  %vm978_vm1 = vweird.f32 %v972_v48 }
 0x513   : > { %v985_v14 = vor.u32 1.1754944e-38, %v984_v9  ;;  %vm983_vm2 = vcmp.eq.f32.partialorder %v982_v11, 8.507059e+37 }
 0x517   : > { %v1470_v1 = vpop.eup %1469 }
 0x518   : > { %v974_v4 = vmul.f32 %v1470_v1, %v972_v48  ;;  %vm979_vm0 = vweird.f32 %v1470_v1 }
 0x519   : > { %vm980_vm14 = vmor %vm978_vm1, %vm979_vm0 }
 0x51a   : > { %v975_v7 = vsub.f32 1.0, %v974_v4 }
 0x51c   : > { %v976_v10 = vmul.f32 %v1470_v1, %v975_v7 }
 0x51e   : > { %v977_v13 = vadd.f32 %v1470_v1, %v976_v10 }
 0x520   : > { %v981_v15 = vsel %vm980_vm14, %v1470_v1, %v977_v13 }
 0x521   : > { %v986_v16 = vsel %vm983_vm2, %v985_v14, %v981_v15 }
 0x522   : > { %v987_v17 = vmul.f32 %v1895_v19, %v986_v16  ;;  %v1224_v18 = vpop.xlane.xlu0 %1223 }
 0x523   : > { %1471 = vrcp.f32 %v1224_v18  ;;  %v1236_v23 = vand.u32 2147483648, %v1224_v18  ;;  %v1234_v26 = vand.u32 2147483647, %v1224_v18  ;;  %vm1230_vm4 = vweird.f32 %v1224_v18 }
 0x524   : > { %1428 = vmatmul.msk.f32.vlgmr.msra.gmra.mxu0 %vm347_vm7, %v987_v17 }
 0x525   : > { %v1237_v28 = vor.u32 1.1754944e-38, %v1236_v23  ;;  %vm1235_vm6 = vcmp.eq.f32.partialorder %v1234_v26, 8.507059e+37 }
 0x529   : > { %v1472_v20 = vpop.eup %1471 }
 0x52a   : > { %v1226_v21 = vmul.f32 %v1472_v20, %v1224_v18  ;;  %vm1231_vm3 = vweird.f32 %v1472_v20 }
 0x52b   : > { %vm1232_vm5 = vmor %vm1230_vm4, %vm1231_vm3 }
 0x52c   : > { %v1227_v22 = vsub.f32 1.0, %v1226_v21 }
 0x52e   : > { %v1228_v25 = vmul.f32 %v1472_v20, %v1227_v22 }
 0x530   : > { %v1229_v27 = vadd.f32 %v1472_v20, %v1228_v25 }
 0x532   : > { %v1233_v29 = vsel %vm1232_vm5, %v1472_v20, %v1229_v27 }
 0x533   : > { %v1238_v19 = vsel %vm1235_vm6, %v1237_v28, %v1233_v29 }
 0x534   : > { %v1239_v30 = vmul.f32 %v1899_v24, %v1238_v19 }
 0x536   : > { %1433 = vmatmul.msk.f32.vlgmr.msra.gmra.mxu1 %vm347_vm7, %v1239_v30 }
 0x5a1   : > { %v1031_v31 = vpop.f32.mrf.mxu0 }
 0x5a2   : > { %v1035_v32 = vrot.slane %v1031_v31, 1  ;;  %v1036_v33 = vrot.slane %v1031_v31, 2  ;;  %v1037_v34 = vrot.slane %v1031_v31, 3  ;;  %1049 = vst.msk [vmem:[%s1786_s23 + $0x2] sm:$0x1] %vm544_vm12, %v1031_v31  ;;  %v1038_v35 = vrot.slane %v1031_v31, 4 }
 0x5a3   : > { %v1039_v36 = vrot.slane %v1031_v31, 5  ;;  %v1040_v63 = vrot.slane %v1031_v31, 6  ;;  %v1041_v24 = vrot.slane %v1031_v31, 7 }
 0x5a4   : > { %1050 = vst.msk [vmem:[%s1786_s23 + $0x6] sm:$0x1] %vm544_vm12, %v1035_v32 }
 0x5a5   : > { %1051 = vst.msk [vmem:[%s1786_s23 + $0xa] sm:$0x1] %vm544_vm12, %v1036_v33 }
 0x5a6   : > { %1052 = vst.msk [vmem:[%s1786_s23 + $0xe] sm:$0x1] %vm544_vm12, %v1037_v34 }
 0x5a7   : > { %1053 = vst.msk [vmem:[%s1786_s23 + $0x12] sm:$0x1] %vm544_vm12, %v1038_v35 }
 0x5a8   : > { %1054 = vst.msk [vmem:[%s1786_s23 + $0x16] sm:$0x1] %vm544_vm12, %v1039_v36 }
 0x5a9   : > { %1055 = vst.msk [vmem:[%s1786_s23 + $0x1a] sm:$0x1] %vm544_vm12, %v1040_v63 }
 0x5aa   : > { %1056 = vst.msk [vmem:[%s1786_s23 + $0x1e] sm:$0x1] %vm544_vm12, %v1041_v24 }
 0x5b3   : > { %v1283_v38 = vpop.f32.mrf.mxu1 }
 0x5b4   : > { %v1287_v39 = vrot.slane %v1283_v38, 1  ;;  %v1288_v58 = vrot.slane %v1283_v38, 2  ;;  %v1289_v40 = vrot.slane %v1283_v38, 3  ;;  %1301 = vst.msk [vmem:[%s1786_s23 + $0x3] sm:$0x1] %vm544_vm12, %v1283_v38  ;;  %v1290_v42 = vrot.slane %v1283_v38, 4 }
 0x5b5   : > { %v1291_v44 = vrot.slane %v1283_v38, 5  ;;  %v1292_v45 = vrot.slane %v1283_v38, 6  ;;  %v1293_v46 = vrot.slane %v1283_v38, 7 }
 0x5b6   : > { %1302 = vst.msk [vmem:[%s1786_s23 + $0x7] sm:$0x1] %vm544_vm12, %v1287_v39 }
 0x5b7   : > { %1303 = vst.msk [vmem:[%s1786_s23 + $0xb] sm:$0x1] %vm544_vm12, %v1288_v58 }
 0x5b8   : > { %1304 = vst.msk [vmem:[%s1786_s23 + $0xf] sm:$0x1] %vm544_vm12, %v1289_v40 }
 0x5b9   : > { %1305 = vst.msk [vmem:[%s1786_s23 + $0x13] sm:$0x1] %vm544_vm12, %v1290_v42 }
 0x5ba   : > { %1306 = vst.msk [vmem:[%s1786_s23 + $0x17] sm:$0x1] %vm544_vm12, %v1291_v44 }
 0x5bb   : > { %1307 = vst.msk [vmem:[%s1786_s23 + $0x1b] sm:$0x1] %vm544_vm12, %v1292_v45 }
 0x5bc   : > { %1308 = vst.msk [vmem:[%s1786_s23 + $0x1f] sm:$0x1] %vm544_vm12, %v1293_v46 }
 0x5bd PF: > { %s15_s18 = sadd.s32 1, %s1479_s18  }
 0x5be   : > { %p12_p4 = scmp.ge.s32.totalorder %s15_s18, 4  }
 0x5c0   :  { %14 = sbr.rel (!%p12_p4) target bundleno = 1 (0x1), region = 82 }

</bundles_post_ra>
